<compile_context>
chip_gen: v7x
topology: tpu7x:2x2x1
jax: 0.10.0
libtpu: 0.0.40
codegen_flags: <defaults>
</compile_context>

<pallas_src>
import functools

import jax
import jax.numpy as jnp
from jax.experimental import pallas as pl
from jax.experimental.pallas import tpu as pltpu


def _round_up(n, m):
    return (n + m - 1) // m * m


def deepffm_kernel(idx_ref, emb_ref, ffm_w_ref, ffm_b_ref,
                   w1_ref, b1_ref, w2_ref, b2_ref, wout_ref,
                   out_ref, *, field_dims, embed_dim):
    """One batch tile, feature-major layout (batch on the lane axis).

    idx_ref   : (F, TB)        int32  raw categorical indices (batch-tiled)
    emb_ref   : (F*E, Vmax)    f32    per-field embedding tables, transposed
    ffm_w_ref : (1, input_dim) f32    FFM linear weights
    ffm_b_ref : (1, 1)         f32    FFM linear bias
    w1_ref    : (H1p, F*E)     bf16   DNN layer-1 weight (transposed, 16-padded)
    b1_ref    : (H1p, 1)       f32
    w2_ref    : (H2p, H1p)     bf16   DNN layer-2 weight (transposed, 16-padded)
    b2_ref    : (H2p, 1)       f32
    wout_ref  : (H2p, 1)       f32    DNN output weights as a column
    out_ref   : (1, TB)        f32    y = y_lin + y_pairwise + y_dnn
    """
    F = len(field_dims)
    E = embed_dim
    TB = out_ref.shape[1]

    idx = idx_ref[...]                                   # (F, TB) int32
    emb = emb_ref[...]                                   # (F*E, Vmax) f32
    wrow = ffm_w_ref[...]                                # (1, input_dim) f32
    idx_rows = [idx[f:f + 1, :] for f in range(F)]       # F x (1, TB)

    # ---- In-kernel embedding + FFM-weight gather (exact f32, VPU only) ----
    # TODO(synk): for large vocabularies the VMEM-resident tables and this
    # unrolled select-gather do not scale; switch to scalar-prefetched indices
    # + manual DMA gather from HBM.
    fields = []                                          # F x (E, TB)
    w_rows = []                                          # F x (1, TB)
    for f in range(F):
        e_acc = jnp.zeros((E, TB), jnp.float32)
        w_acc = jnp.zeros((1, TB), jnp.float32)
        for v in range(field_dims[f]):
            m = (idx_rows[f] == v).astype(jnp.float32)   # (1, TB)
            e_acc = e_acc + m * emb[f * E:(f + 1) * E, v:v + 1]
            w_acc = w_acc + m * wrow[0:1, v:v + 1]
        fields.append(e_acc)
        w_rows.append(w_acc)

    # ---- FFM linear term: raw-index scatter semantics (duplicates collapse) ----
    lin = w_rows[0]
    for f in range(1, F):
        dup = (idx_rows[f] == idx_rows[0]).astype(jnp.float32)
        for g in range(1, f):
            dup = jnp.maximum(dup, (idx_rows[f] == idx_rows[g]).astype(jnp.float32))
        lin = lin + (1.0 - dup) * w_rows[f]              # keep first occurrence only
    lin = lin + ffm_b_ref[...]                           # (1, 1) broadcast

    # ---- FFM pairwise term, entirely on VPU/XLU (exact f32, no matmuls) ----
    fs = fields[0]
    sq = fields[0] * fields[0]
    for f in range(1, F):
        fs = fs + fields[f]
        sq = sq + fields[f] * fields[f]
    pair = 0.5 * (jnp.sum(fs * fs, axis=0, keepdims=True)
                  - jnp.sum(sq, axis=0, keepdims=True))  # (1, TB)

    # ---- DNN: two small MXU matmuls (bf16 in, f32 acc); dropout = identity ----
    dft = jnp.concatenate(fields, axis=0).astype(jnp.bfloat16)       # (F*E, TB)
    h = jnp.dot(w1_ref[...], dft, preferred_element_type=jnp.float32)
    h = jnp.maximum(h + b1_ref[...], 0.0)                            # (H1p, TB)
    h = jnp.dot(w2_ref[...], h.astype(jnp.bfloat16),
                preferred_element_type=jnp.float32)
    h = jnp.maximum(h + b2_ref[...], 0.0)                            # (H2p, TB)
    # output linear (bias-free): VPU multiply + short sublane reduce.
    dnn = jnp.sum(h * wout_ref[...], axis=0, keepdims=True)          # (1, TB)

    out_ref[...] = pair + dnn + lin


def _prepare_kernel_weights(params, field_dims, embed_dim):
    """Pad / transpose the small resident weights (done under the same jit)."""
    F = len(field_dims)
    E = embed_dim
    d_in = F * E
    w1, b1 = params["w1"], params["b1"]                  # (d_in, H1), (H1,)
    w2, b2 = params["w2"], params["b2"]                  # (H1, H2), (H2,)
    wout = params["wout"]                                # (H2,)
    h1, h2 = w1.shape[1], w2.shape[1]
    h1p, h2p = _round_up(h1, 16), _round_up(h2, 16)      # bf16 sublane packing

    w1t = jnp.zeros((h1p, d_in), jnp.float32).at[:h1, :].set(w1.T).astype(jnp.bfloat16)
    b1t = jnp.zeros((h1p, 1), jnp.float32).at[:h1, 0].set(b1)
    w2t = jnp.zeros((h2p, h1p), jnp.float32).at[:h2, :h1].set(w2.T).astype(jnp.bfloat16)
    b2t = jnp.zeros((h2p, 1), jnp.float32).at[:h2, 0].set(b2)
    woutt = jnp.zeros((h2p, 1), jnp.float32).at[:h2, 0].set(wout)

    vmax = max(field_dims)
    emb_t = jnp.zeros((d_in, vmax), jnp.float32)
    for f in range(F):
        emb_t = emb_t.at[f * E:(f + 1) * E, :field_dims[f]].set(
            params["embeddings"][f].T)
    ffm_w = params["ffm_w"].reshape(1, -1).astype(jnp.float32)
    ffm_b = params["ffm_b"].reshape(1, 1).astype(jnp.float32)
    return emb_t, ffm_w, ffm_b, w1t, b1t, w2t, b2t, woutt


@functools.partial(jax.jit, static_argnames=("field_dims", "tb"))
def deepffm_forward(x, params, field_dims, tb=2048):
    """x: (B, num_fields) int32 categorical indices.  Returns (B,) f32.

    tb: batch tile (multiple of 128).  Production: sweep 2048-8192; on v7x
    keep the tile count >= 2 (ideally even) for the 2 TensorCores and keep
    double-buffered tiles under the ~32 MiB scoped VMEM limit (trivially true
    here: the per-tile working set is a few hundred KiB).
    """
    B, F = x.shape
    E = params["embeddings"][0].shape[1]
    assert E % 8 == 0, "embed_dim must be a multiple of 8 (f32 sublane)"
    assert tb % 128 == 0, "batch tile must be a multiple of the lane width"
    assert F == len(field_dims)

    emb_t, ffm_w, ffm_b, w1t, b1t, w2t, b2t, woutt = _prepare_kernel_weights(
        params, field_dims, E)

    num_tiles = pl.cdiv(B, tb)
    bp = num_tiles * tb
    # Only the indices (F*4 B/sample) are streamed; the dense activations are
    # built in-kernel, so they never round-trip HBM.
    idx_p = jnp.zeros((F, bp), jnp.int32).at[:, :B].set(x.T.astype(jnp.int32))

    kernel = functools.partial(deepffm_kernel, field_dims=field_dims, embed_dim=E)
    out = pl.pallas_call(
        kernel,
        out_shape=jax.ShapeDtypeStruct((1, bp), jnp.float32),
        grid=(num_tiles,),
        in_specs=[
            pl.BlockSpec((F, tb), lambda i: (0, i)),        # batch-tiled indices
            pl.BlockSpec(emb_t.shape, lambda i: (0, 0)),    # resident tables
            pl.BlockSpec(ffm_w.shape, lambda i: (0, 0)),    # resident weights...
            pl.BlockSpec(ffm_b.shape, lambda i: (0, 0)),
            pl.BlockSpec(w1t.shape, lambda i: (0, 0)),
            pl.BlockSpec(b1t.shape, lambda i: (0, 0)),
            pl.BlockSpec(w2t.shape, lambda i: (0, 0)),
            pl.BlockSpec(b2t.shape, lambda i: (0, 0)),
            pl.BlockSpec(woutt.shape, lambda i: (0, 0)),
        ],
        out_specs=pl.BlockSpec((1, tb), lambda i: (0, i)),  # lane-dense rows
        compiler_params=pltpu.CompilerParams(
            dimension_semantics=("parallel",),   # shard batch tiles over TCs (v7x)
            vmem_limit_bytes=32 * 1024 * 1024,   # working set << 32 MiB on all gens
        ),
    )(idx_p, emb_t, ffm_w, ffm_b, w1t, b1t, w2t, b2t, woutt)
    return out[0, :B]


# ----------------------------- test harness ---------------------------------
def build_params(key, field_dims, embed_dim, mlp_dims):
    F = len(field_dims)
    input_dim = sum(field_dims)
    d_in = F * embed_dim
    h1, h2 = mlp_dims
    ks = jax.random.split(key, 4 + F)
    p = {}
    # FFM linear: weight (input_dim,) ~ N(0, 0.01), bias 0.
    p["ffm_w"] = 0.01 * jax.random.normal(ks[0], (input_dim,), jnp.float32)
    p["ffm_b"] = jnp.zeros((), jnp.float32)
    # DNN linears: N(0, 0.01) weights, zero biases (stored (in, out)).
    p["w1"] = 0.01 * jax.random.normal(ks[1], (d_in, h1), jnp.float32)
    p["b1"] = jnp.zeros((h1,), jnp.float32)
    p["w2"] = 0.01 * jax.random.normal(ks[2], (h1, h2), jnp.float32)
    p["b2"] = jnp.zeros((h2,), jnp.float32)
    p["wout"] = 0.01 * jax.random.normal(ks[3], (h2,), jnp.float32)
    # Embedding tables: xavier_uniform_
    embs = []
    for f, fd in enumerate(field_dims):
        bound = (6.0 / (fd + embed_dim)) ** 0.5
        embs.append(jax.random.uniform(ks[4 + f], (fd, embed_dim), jnp.float32,
                                       -bound, bound))
    p["embeddings"] = embs
    return p


def reference_forward(x, params, field_dims):
    """Pure-JAX reference mirroring the PyTorch forward (f32 throughout)."""
    B, F = x.shape
    input_dim = sum(field_dims)
    E = params["embeddings"][0].shape[1]
    with jax.default_matmul_precision("highest"):
        sparse = jnp.zeros((B, input_dim), jnp.float32)
        sparse = sparse.at[jnp.arange(B)[:, None], x].set(1.0)   # raw indices, as in torch
        dense = jnp.stack([params["embeddings"][f][x[:, f]] for f in range(F)],
                          axis=1)
        y_lin = sparse @ params["ffm_w"] + params["ffm_b"]
        sos = jnp.square(jnp.sum(dense, axis=1))
        sofs = jnp.sum(jnp.square(dense), axis=1)
        y_pair = 0.5 * jnp.sum(sos - sofs, axis=1)
        dflat = dense.reshape(B, F * E)
        h = jnp.maximum(dflat @ params["w1"] + params["b1"], 0.0)
        h = jnp.maximum(h @ params["w2"] + params["b2"], 0.0)
        y_dnn = h @ params["wout"]
        return y_lin + y_pair + y_dnn


if __name__ == "__main__":
    field_dims = (8, 12, 6, 10)
    embed_dim = 8
    mlp_dims = (32, 16)
    batch = 300          # non-multiple of the tile -> exercises batch padding
    tb = 256             # 2 even tiles here; use 2048-8192 for production batches

    key = jax.random.PRNGKey(0)
    k_param, k_x = jax.random.split(key)
    params = build_params(k_param, field_dims, embed_dim, mlp_dims)

    xkeys = jax.random.split(k_x, len(field_dims))
    cols = [jax.random.randint(xkeys[f], (batch,), 0, fd, dtype=jnp.int32)
            for f, fd in enumerate(field_dims)]
    x = jnp.stack(cols, axis=1)                                  # (B, num_fields)

    y = deepffm_forward(x, params, field_dims=field_dims, tb=tb)
    jax.block_until_ready(y)

    y_ref = reference_forward(x, params, field_dims)
    assert y.shape == (batch,)
    max_err = float(jnp.max(jnp.abs(y - y_ref)))
    assert jnp.allclose(y, y_ref, atol=1e-3, rtol=1e-3), max_err

    print("KERNEL_OK")
</pallas_src>

<mosaic_0001>
module attributes {stable_mosaic.version = 11 : i64} {
  func.func @deepffm_kernel(%arg0: i32, %arg1: memref<4x256xi32, #tpu.memory_space<vmem>>, %arg2: memref<32x12xf32, #tpu.memory_space<vmem>>, %arg3: memref<1x36xf32, #tpu.memory_space<vmem>>, %arg4: memref<1x1xf32, #tpu.memory_space<vmem>>, %arg5: memref<32x32xbf16, #tpu.memory_space<vmem>>, %arg6: memref<32x1xf32, #tpu.memory_space<vmem>>, %arg7: memref<16x32xbf16, #tpu.memory_space<vmem>>, %arg8: memref<16x1xf32, #tpu.memory_space<vmem>>, %arg9: memref<16x1xf32, #tpu.memory_space<vmem>>, %arg10: memref<1x256xf32, #tpu.memory_space<vmem>>) attributes {dimension_semantics = [#tpu.dimension_semantics<parallel>], iteration_bounds = array<i64: 2>, scalar_prefetch = 0 : i64, scratch_operands = 0 : i64, tpu.core_type = #tpu.core_type<tc>, window_params = [{transform_indices = @transform_0, window_bounds = array<i64: 4, 256>}, {pipeline_mode = #tpu.pipeline_mode<synchronous>, transform_indices = @transform_1, window_bounds = array<i64: 32, 12>}, {pipeline_mode = #tpu.pipeline_mode<synchronous>, transform_indices = @transform_2, window_bounds = array<i64: 1, 36>}, {pipeline_mode = #tpu.pipeline_mode<synchronous>, transform_indices = @transform_3, window_bounds = array<i64: 1, 1>}, {pipeline_mode = #tpu.pipeline_mode<synchronous>, transform_indices = @transform_4, window_bounds = array<i64: 32, 32>}, {pipeline_mode = #tpu.pipeline_mode<synchronous>, transform_indices = @transform_5, window_bounds = array<i64: 32, 1>}, {pipeline_mode = #tpu.pipeline_mode<synchronous>, transform_indices = @transform_6, window_bounds = array<i64: 16, 32>}, {pipeline_mode = #tpu.pipeline_mode<synchronous>, transform_indices = @transform_7, window_bounds = array<i64: 16, 1>}, {pipeline_mode = #tpu.pipeline_mode<synchronous>, transform_indices = @transform_8, window_bounds = array<i64: 16, 1>}, {transform_indices = @transform_9, window_bounds = array<i64: 1, 256>}]} {
    %c0 = arith.constant 0 : index
    %c0_0 = arith.constant 0 : index
    %0 = vector.load %arg1[%c0, %c0_0] : memref<4x256xi32, #tpu.memory_space<vmem>>, vector<4x256xi32>
    %c0_1 = arith.constant 0 : index
    %c0_2 = arith.constant 0 : index
    %1 = vector.load %arg2[%c0_1, %c0_2] : memref<32x12xf32, #tpu.memory_space<vmem>>, vector<32x12xf32>
    %c0_3 = arith.constant 0 : index
    %c0_4 = arith.constant 0 : index
    %2 = vector.load %arg3[%c0_3, %c0_4] : memref<1x36xf32, #tpu.memory_space<vmem>>, vector<1x36xf32>
    %3 = vector.extract_strided_slice %0 {offsets = [0, 0], sizes = [1, 256], strides = [1, 1]} : vector<4x256xi32> to vector<1x256xi32>
    %4 = vector.extract_strided_slice %0 {offsets = [1, 0], sizes = [1, 256], strides = [1, 1]} : vector<4x256xi32> to vector<1x256xi32>
    %5 = vector.extract_strided_slice %0 {offsets = [2, 0], sizes = [1, 256], strides = [1, 1]} : vector<4x256xi32> to vector<1x256xi32>
    %6 = vector.extract_strided_slice %0 {offsets = [3, 0], sizes = [1, 256], strides = [1, 1]} : vector<4x256xi32> to vector<1x256xi32>
    %cst = arith.constant 0.000000e+00 : f32
    %7 = vector.broadcast %cst : f32 to vector<8x256xf32>
    %cst_5 = arith.constant 0.000000e+00 : f32
    %8 = vector.broadcast %cst_5 : f32 to vector<1x256xf32>
    %c0_i32 = arith.constant 0 : i32
    %9 = vector.broadcast %c0_i32 : i32 to vector<1x256xi32>
    %10 = arith.cmpi eq, %3, %9 : vector<1x256xi32>
    %11 = arith.extui %10 : vector<1x256xi1> to vector<1x256xi32>
    %12 = arith.sitofp %11 : vector<1x256xi32> to vector<1x256xf32>
    %13 = vector.extract_strided_slice %1 {offsets = [0, 0], sizes = [8, 1], strides = [1, 1]} : vector<32x12xf32> to vector<8x1xf32>
    %14 = vector.broadcast %12 : vector<1x256xf32> to vector<8x256xf32>
    %15 = vector.broadcast %13 : vector<8x1xf32> to vector<8x256xf32>
    %16 = arith.mulf %14, %15 : vector<8x256xf32>
    %17 = arith.addf %7, %16 : vector<8x256xf32>
    %18 = vector.extract_strided_slice %2 {offsets = [0, 0], sizes = [1, 1], strides = [1, 1]} : vector<1x36xf32> to vector<1x1xf32>
    %19 = vector.broadcast %18 : vector<1x1xf32> to vector<1x256xf32>
    %20 = arith.mulf %12, %19 : vector<1x256xf32>
    %21 = arith.addf %8, %20 : vector<1x256xf32>
    %c1_i32 = arith.constant 1 : i32
    %22 = vector.broadcast %c1_i32 : i32 to vector<1x256xi32>
    %23 = arith.cmpi eq, %3, %22 : vector<1x256xi32>
    %24 = arith.extui %23 : vector<1x256xi1> to vector<1x256xi32>
    %25 = arith.sitofp %24 : vector<1x256xi32> to vector<1x256xf32>
    %26 = vector.extract_strided_slice %1 {offsets = [0, 1], sizes = [8, 1], strides = [1, 1]} : vector<32x12xf32> to vector<8x1xf32>
    %27 = vector.broadcast %25 : vector<1x256xf32> to vector<8x256xf32>
    %28 = vector.broadcast %26 : vector<8x1xf32> to vector<8x256xf32>
    %29 = arith.mulf %27, %28 : vector<8x256xf32>
    %30 = arith.addf %17, %29 : vector<8x256xf32>
    %31 = vector.extract_strided_slice %2 {offsets = [0, 1], sizes = [1, 1], strides = [1, 1]} : vector<1x36xf32> to vector<1x1xf32>
    %32 = vector.broadcast %31 : vector<1x1xf32> to vector<1x256xf32>
    %33 = arith.mulf %25, %32 : vector<1x256xf32>
    %34 = arith.addf %21, %33 : vector<1x256xf32>
    %c2_i32 = arith.constant 2 : i32
    %35 = vector.broadcast %c2_i32 : i32 to vector<1x256xi32>
    %36 = arith.cmpi eq, %3, %35 : vector<1x256xi32>
    %37 = arith.extui %36 : vector<1x256xi1> to vector<1x256xi32>
    %38 = arith.sitofp %37 : vector<1x256xi32> to vector<1x256xf32>
    %39 = vector.extract_strided_slice %1 {offsets = [0, 2], sizes = [8, 1], strides = [1, 1]} : vector<32x12xf32> to vector<8x1xf32>
    %40 = vector.broadcast %38 : vector<1x256xf32> to vector<8x256xf32>
    %41 = vector.broadcast %39 : vector<8x1xf32> to vector<8x256xf32>
    %42 = arith.mulf %40, %41 : vector<8x256xf32>
    %43 = arith.addf %30, %42 : vector<8x256xf32>
    %44 = vector.extract_strided_slice %2 {offsets = [0, 2], sizes = [1, 1], strides = [1, 1]} : vector<1x36xf32> to vector<1x1xf32>
    %45 = vector.broadcast %44 : vector<1x1xf32> to vector<1x256xf32>
    %46 = arith.mulf %38, %45 : vector<1x256xf32>
    %47 = arith.addf %34, %46 : vector<1x256xf32>
    %c3_i32 = arith.constant 3 : i32
    %48 = vector.broadcast %c3_i32 : i32 to vector<1x256xi32>
    %49 = arith.cmpi eq, %3, %48 : vector<1x256xi32>
    %50 = arith.extui %49 : vector<1x256xi1> to vector<1x256xi32>
    %51 = arith.sitofp %50 : vector<1x256xi32> to vector<1x256xf32>
    %52 = vector.extract_strided_slice %1 {offsets = [0, 3], sizes = [8, 1], strides = [1, 1]} : vector<32x12xf32> to vector<8x1xf32>
    %53 = vector.broadcast %51 : vector<1x256xf32> to vector<8x256xf32>
    %54 = vector.broadcast %52 : vector<8x1xf32> to vector<8x256xf32>
    %55 = arith.mulf %53, %54 : vector<8x256xf32>
    %56 = arith.addf %43, %55 : vector<8x256xf32>
    %57 = vector.extract_strided_slice %2 {offsets = [0, 3], sizes = [1, 1], strides = [1, 1]} : vector<1x36xf32> to vector<1x1xf32>
    %58 = vector.broadcast %57 : vector<1x1xf32> to vector<1x256xf32>
    %59 = arith.mulf %51, %58 : vector<1x256xf32>
    %60 = arith.addf %47, %59 : vector<1x256xf32>
    %c4_i32 = arith.constant 4 : i32
    %61 = vector.broadcast %c4_i32 : i32 to vector<1x256xi32>
    %62 = arith.cmpi eq, %3, %61 : vector<1x256xi32>
    %63 = arith.extui %62 : vector<1x256xi1> to vector<1x256xi32>
    %64 = arith.sitofp %63 : vector<1x256xi32> to vector<1x256xf32>
    %65 = vector.extract_strided_slice %1 {offsets = [0, 4], sizes = [8, 1], strides = [1, 1]} : vector<32x12xf32> to vector<8x1xf32>
    %66 = vector.broadcast %64 : vector<1x256xf32> to vector<8x256xf32>
    %67 = vector.broadcast %65 : vector<8x1xf32> to vector<8x256xf32>
    %68 = arith.mulf %66, %67 : vector<8x256xf32>
    %69 = arith.addf %56, %68 : vector<8x256xf32>
    %70 = vector.extract_strided_slice %2 {offsets = [0, 4], sizes = [1, 1], strides = [1, 1]} : vector<1x36xf32> to vector<1x1xf32>
    %71 = vector.broadcast %70 : vector<1x1xf32> to vector<1x256xf32>
    %72 = arith.mulf %64, %71 : vector<1x256xf32>
    %73 = arith.addf %60, %72 : vector<1x256xf32>
    %c5_i32 = arith.constant 5 : i32
    %74 = vector.broadcast %c5_i32 : i32 to vector<1x256xi32>
    %75 = arith.cmpi eq, %3, %74 : vector<1x256xi32>
    %76 = arith.extui %75 : vector<1x256xi1> to vector<1x256xi32>
    %77 = arith.sitofp %76 : vector<1x256xi32> to vector<1x256xf32>
    %78 = vector.extract_strided_slice %1 {offsets = [0, 5], sizes = [8, 1], strides = [1, 1]} : vector<32x12xf32> to vector<8x1xf32>
    %79 = vector.broadcast %77 : vector<1x256xf32> to vector<8x256xf32>
    %80 = vector.broadcast %78 : vector<8x1xf32> to vector<8x256xf32>
    %81 = arith.mulf %79, %80 : vector<8x256xf32>
    %82 = arith.addf %69, %81 : vector<8x256xf32>
    %83 = vector.extract_strided_slice %2 {offsets = [0, 5], sizes = [1, 1], strides = [1, 1]} : vector<1x36xf32> to vector<1x1xf32>
    %84 = vector.broadcast %83 : vector<1x1xf32> to vector<1x256xf32>
    %85 = arith.mulf %77, %84 : vector<1x256xf32>
    %86 = arith.addf %73, %85 : vector<1x256xf32>
    %c6_i32 = arith.constant 6 : i32
    %87 = vector.broadcast %c6_i32 : i32 to vector<1x256xi32>
    %88 = arith.cmpi eq, %3, %87 : vector<1x256xi32>
    %89 = arith.extui %88 : vector<1x256xi1> to vector<1x256xi32>
    %90 = arith.sitofp %89 : vector<1x256xi32> to vector<1x256xf32>
    %91 = vector.extract_strided_slice %1 {offsets = [0, 6], sizes = [8, 1], strides = [1, 1]} : vector<32x12xf32> to vector<8x1xf32>
    %92 = vector.broadcast %90 : vector<1x256xf32> to vector<8x256xf32>
    %93 = vector.broadcast %91 : vector<8x1xf32> to vector<8x256xf32>
    %94 = arith.mulf %92, %93 : vector<8x256xf32>
    %95 = arith.addf %82, %94 : vector<8x256xf32>
    %96 = vector.extract_strided_slice %2 {offsets = [0, 6], sizes = [1, 1], strides = [1, 1]} : vector<1x36xf32> to vector<1x1xf32>
    %97 = vector.broadcast %96 : vector<1x1xf32> to vector<1x256xf32>
    %98 = arith.mulf %90, %97 : vector<1x256xf32>
    %99 = arith.addf %86, %98 : vector<1x256xf32>
    %c7_i32 = arith.constant 7 : i32
    %100 = vector.broadcast %c7_i32 : i32 to vector<1x256xi32>
    %101 = arith.cmpi eq, %3, %100 : vector<1x256xi32>
    %102 = arith.extui %101 : vector<1x256xi1> to vector<1x256xi32>
    %103 = arith.sitofp %102 : vector<1x256xi32> to vector<1x256xf32>
    %104 = vector.extract_strided_slice %1 {offsets = [0, 7], sizes = [8, 1], strides = [1, 1]} : vector<32x12xf32> to vector<8x1xf32>
    %105 = vector.broadcast %103 : vector<1x256xf32> to vector<8x256xf32>
    %106 = vector.broadcast %104 : vector<8x1xf32> to vector<8x256xf32>
    %107 = arith.mulf %105, %106 : vector<8x256xf32>
    %108 = arith.addf %95, %107 : vector<8x256xf32>
    %109 = vector.extract_strided_slice %2 {offsets = [0, 7], sizes = [1, 1], strides = [1, 1]} : vector<1x36xf32> to vector<1x1xf32>
    %110 = vector.broadcast %109 : vector<1x1xf32> to vector<1x256xf32>
    %111 = arith.mulf %103, %110 : vector<1x256xf32>
    %112 = arith.addf %99, %111 : vector<1x256xf32>
    %cst_6 = arith.constant 0.000000e+00 : f32
    %113 = vector.broadcast %cst_6 : f32 to vector<8x256xf32>
    %cst_7 = arith.constant 0.000000e+00 : f32
    %114 = vector.broadcast %cst_7 : f32 to vector<1x256xf32>
    %c0_i32_8 = arith.constant 0 : i32
    %115 = vector.broadcast %c0_i32_8 : i32 to vector<1x256xi32>
    %116 = arith.cmpi eq, %4, %115 : vector<1x256xi32>
    %117 = arith.extui %116 : vector<1x256xi1> to vector<1x256xi32>
    %118 = arith.sitofp %117 : vector<1x256xi32> to vector<1x256xf32>
    %119 = vector.extract_strided_slice %1 {offsets = [8, 0], sizes = [8, 1], strides = [1, 1]} : vector<32x12xf32> to vector<8x1xf32>
    %120 = vector.broadcast %118 : vector<1x256xf32> to vector<8x256xf32>
    %121 = vector.broadcast %119 : vector<8x1xf32> to vector<8x256xf32>
    %122 = arith.mulf %120, %121 : vector<8x256xf32>
    %123 = arith.addf %113, %122 : vector<8x256xf32>
    %124 = vector.extract_strided_slice %2 {offsets = [0, 0], sizes = [1, 1], strides = [1, 1]} : vector<1x36xf32> to vector<1x1xf32>
    %125 = vector.broadcast %124 : vector<1x1xf32> to vector<1x256xf32>
    %126 = arith.mulf %118, %125 : vector<1x256xf32>
    %127 = arith.addf %114, %126 : vector<1x256xf32>
    %c1_i32_9 = arith.constant 1 : i32
    %128 = vector.broadcast %c1_i32_9 : i32 to vector<1x256xi32>
    %129 = arith.cmpi eq, %4, %128 : vector<1x256xi32>
    %130 = arith.extui %129 : vector<1x256xi1> to vector<1x256xi32>
    %131 = arith.sitofp %130 : vector<1x256xi32> to vector<1x256xf32>
    %132 = vector.extract_strided_slice %1 {offsets = [8, 1], sizes = [8, 1], strides = [1, 1]} : vector<32x12xf32> to vector<8x1xf32>
    %133 = vector.broadcast %131 : vector<1x256xf32> to vector<8x256xf32>
    %134 = vector.broadcast %132 : vector<8x1xf32> to vector<8x256xf32>
    %135 = arith.mulf %133, %134 : vector<8x256xf32>
    %136 = arith.addf %123, %135 : vector<8x256xf32>
    %137 = vector.extract_strided_slice %2 {offsets = [0, 1], sizes = [1, 1], strides = [1, 1]} : vector<1x36xf32> to vector<1x1xf32>
    %138 = vector.broadcast %137 : vector<1x1xf32> to vector<1x256xf32>
    %139 = arith.mulf %131, %138 : vector<1x256xf32>
    %140 = arith.addf %127, %139 : vector<1x256xf32>
    %c2_i32_10 = arith.constant 2 : i32
    %141 = vector.broadcast %c2_i32_10 : i32 to vector<1x256xi32>
    %142 = arith.cmpi eq, %4, %141 : vector<1x256xi32>
    %143 = arith.extui %142 : vector<1x256xi1> to vector<1x256xi32>
    %144 = arith.sitofp %143 : vector<1x256xi32> to vector<1x256xf32>
    %145 = vector.extract_strided_slice %1 {offsets = [8, 2], sizes = [8, 1], strides = [1, 1]} : vector<32x12xf32> to vector<8x1xf32>
    %146 = vector.broadcast %144 : vector<1x256xf32> to vector<8x256xf32>
    %147 = vector.broadcast %145 : vector<8x1xf32> to vector<8x256xf32>
    %148 = arith.mulf %146, %147 : vector<8x256xf32>
    %149 = arith.addf %136, %148 : vector<8x256xf32>
    %150 = vector.extract_strided_slice %2 {offsets = [0, 2], sizes = [1, 1], strides = [1, 1]} : vector<1x36xf32> to vector<1x1xf32>
    %151 = vector.broadcast %150 : vector<1x1xf32> to vector<1x256xf32>
    %152 = arith.mulf %144, %151 : vector<1x256xf32>
    %153 = arith.addf %140, %152 : vector<1x256xf32>
    %c3_i32_11 = arith.constant 3 : i32
    %154 = vector.broadcast %c3_i32_11 : i32 to vector<1x256xi32>
    %155 = arith.cmpi eq, %4, %154 : vector<1x256xi32>
    %156 = arith.extui %155 : vector<1x256xi1> to vector<1x256xi32>
    %157 = arith.sitofp %156 : vector<1x256xi32> to vector<1x256xf32>
    %158 = vector.extract_strided_slice %1 {offsets = [8, 3], sizes = [8, 1], strides = [1, 1]} : vector<32x12xf32> to vector<8x1xf32>
    %159 = vector.broadcast %157 : vector<1x256xf32> to vector<8x256xf32>
    %160 = vector.broadcast %158 : vector<8x1xf32> to vector<8x256xf32>
    %161 = arith.mulf %159, %160 : vector<8x256xf32>
    %162 = arith.addf %149, %161 : vector<8x256xf32>
    %163 = vector.extract_strided_slice %2 {offsets = [0, 3], sizes = [1, 1], strides = [1, 1]} : vector<1x36xf32> to vector<1x1xf32>
    %164 = vector.broadcast %163 : vector<1x1xf32> to vector<1x256xf32>
    %165 = arith.mulf %157, %164 : vector<1x256xf32>
    %166 = arith.addf %153, %165 : vector<1x256xf32>
    %c4_i32_12 = arith.constant 4 : i32
    %167 = vector.broadcast %c4_i32_12 : i32 to vector<1x256xi32>
    %168 = arith.cmpi eq, %4, %167 : vector<1x256xi32>
    %169 = arith.extui %168 : vector<1x256xi1> to vector<1x256xi32>
    %170 = arith.sitofp %169 : vector<1x256xi32> to vector<1x256xf32>
    %171 = vector.extract_strided_slice %1 {offsets = [8, 4], sizes = [8, 1], strides = [1, 1]} : vector<32x12xf32> to vector<8x1xf32>
    %172 = vector.broadcast %170 : vector<1x256xf32> to vector<8x256xf32>
    %173 = vector.broadcast %171 : vector<8x1xf32> to vector<8x256xf32>
    %174 = arith.mulf %172, %173 : vector<8x256xf32>
    %175 = arith.addf %162, %174 : vector<8x256xf32>
    %176 = vector.extract_strided_slice %2 {offsets = [0, 4], sizes = [1, 1], strides = [1, 1]} : vector<1x36xf32> to vector<1x1xf32>
    %177 = vector.broadcast %176 : vector<1x1xf32> to vector<1x256xf32>
    %178 = arith.mulf %170, %177 : vector<1x256xf32>
    %179 = arith.addf %166, %178 : vector<1x256xf32>
    %c5_i32_13 = arith.constant 5 : i32
    %180 = vector.broadcast %c5_i32_13 : i32 to vector<1x256xi32>
    %181 = arith.cmpi eq, %4, %180 : vector<1x256xi32>
    %182 = arith.extui %181 : vector<1x256xi1> to vector<1x256xi32>
    %183 = arith.sitofp %182 : vector<1x256xi32> to vector<1x256xf32>
    %184 = vector.extract_strided_slice %1 {offsets = [8, 5], sizes = [8, 1], strides = [1, 1]} : vector<32x12xf32> to vector<8x1xf32>
    %185 = vector.broadcast %183 : vector<1x256xf32> to vector<8x256xf32>
    %186 = vector.broadcast %184 : vector<8x1xf32> to vector<8x256xf32>
    %187 = arith.mulf %185, %186 : vector<8x256xf32>
    %188 = arith.addf %175, %187 : vector<8x256xf32>
    %189 = vector.extract_strided_slice %2 {offsets = [0, 5], sizes = [1, 1], strides = [1, 1]} : vector<1x36xf32> to vector<1x1xf32>
    %190 = vector.broadcast %189 : vector<1x1xf32> to vector<1x256xf32>
    %191 = arith.mulf %183, %190 : vector<1x256xf32>
    %192 = arith.addf %179, %191 : vector<1x256xf32>
    %c6_i32_14 = arith.constant 6 : i32
    %193 = vector.broadcast %c6_i32_14 : i32 to vector<1x256xi32>
    %194 = arith.cmpi eq, %4, %193 : vector<1x256xi32>
    %195 = arith.extui %194 : vector<1x256xi1> to vector<1x256xi32>
    %196 = arith.sitofp %195 : vector<1x256xi32> to vector<1x256xf32>
    %197 = vector.extract_strided_slice %1 {offsets = [8, 6], sizes = [8, 1], strides = [1, 1]} : vector<32x12xf32> to vector<8x1xf32>
    %198 = vector.broadcast %196 : vector<1x256xf32> to vector<8x256xf32>
    %199 = vector.broadcast %197 : vector<8x1xf32> to vector<8x256xf32>
    %200 = arith.mulf %198, %199 : vector<8x256xf32>
    %201 = arith.addf %188, %200 : vector<8x256xf32>
    %202 = vector.extract_strided_slice %2 {offsets = [0, 6], sizes = [1, 1], strides = [1, 1]} : vector<1x36xf32> to vector<1x1xf32>
    %203 = vector.broadcast %202 : vector<1x1xf32> to vector<1x256xf32>
    %204 = arith.mulf %196, %203 : vector<1x256xf32>
    %205 = arith.addf %192, %204 : vector<1x256xf32>
    %c7_i32_15 = arith.constant 7 : i32
    %206 = vector.broadcast %c7_i32_15 : i32 to vector<1x256xi32>
    %207 = arith.cmpi eq, %4, %206 : vector<1x256xi32>
    %208 = arith.extui %207 : vector<1x256xi1> to vector<1x256xi32>
    %209 = arith.sitofp %208 : vector<1x256xi32> to vector<1x256xf32>
    %210 = vector.extract_strided_slice %1 {offsets = [8, 7], sizes = [8, 1], strides = [1, 1]} : vector<32x12xf32> to vector<8x1xf32>
    %211 = vector.broadcast %209 : vector<1x256xf32> to vector<8x256xf32>
    %212 = vector.broadcast %210 : vector<8x1xf32> to vector<8x256xf32>
    %213 = arith.mulf %211, %212 : vector<8x256xf32>
    %214 = arith.addf %201, %213 : vector<8x256xf32>
    %215 = vector.extract_strided_slice %2 {offsets = [0, 7], sizes = [1, 1], strides = [1, 1]} : vector<1x36xf32> to vector<1x1xf32>
    %216 = vector.broadcast %215 : vector<1x1xf32> to vector<1x256xf32>
    %217 = arith.mulf %209, %216 : vector<1x256xf32>
    %218 = arith.addf %205, %217 : vector<1x256xf32>
    %c8_i32 = arith.constant 8 : i32
    %219 = vector.broadcast %c8_i32 : i32 to vector<1x256xi32>
    %220 = arith.cmpi eq, %4, %219 : vector<1x256xi32>
    %221 = arith.extui %220 : vector<1x256xi1> to vector<1x256xi32>
    %222 = arith.sitofp %221 : vector<1x256xi32> to vector<1x256xf32>
    %223 = vector.extract_strided_slice %1 {offsets = [8, 8], sizes = [8, 1], strides = [1, 1]} : vector<32x12xf32> to vector<8x1xf32>
    %224 = vector.broadcast %222 : vector<1x256xf32> to vector<8x256xf32>
    %225 = vector.broadcast %223 : vector<8x1xf32> to vector<8x256xf32>
    %226 = arith.mulf %224, %225 : vector<8x256xf32>
    %227 = arith.addf %214, %226 : vector<8x256xf32>
    %228 = vector.extract_strided_slice %2 {offsets = [0, 8], sizes = [1, 1], strides = [1, 1]} : vector<1x36xf32> to vector<1x1xf32>
    %229 = vector.broadcast %228 : vector<1x1xf32> to vector<1x256xf32>
    %230 = arith.mulf %222, %229 : vector<1x256xf32>
    %231 = arith.addf %218, %230 : vector<1x256xf32>
    %c9_i32 = arith.constant 9 : i32
    %232 = vector.broadcast %c9_i32 : i32 to vector<1x256xi32>
    %233 = arith.cmpi eq, %4, %232 : vector<1x256xi32>
    %234 = arith.extui %233 : vector<1x256xi1> to vector<1x256xi32>
    %235 = arith.sitofp %234 : vector<1x256xi32> to vector<1x256xf32>
    %236 = vector.extract_strided_slice %1 {offsets = [8, 9], sizes = [8, 1], strides = [1, 1]} : vector<32x12xf32> to vector<8x1xf32>
    %237 = vector.broadcast %235 : vector<1x256xf32> to vector<8x256xf32>
    %238 = vector.broadcast %236 : vector<8x1xf32> to vector<8x256xf32>
    %239 = arith.mulf %237, %238 : vector<8x256xf32>
    %240 = arith.addf %227, %239 : vector<8x256xf32>
    %241 = vector.extract_strided_slice %2 {offsets = [0, 9], sizes = [1, 1], strides = [1, 1]} : vector<1x36xf32> to vector<1x1xf32>
    %242 = vector.broadcast %241 : vector<1x1xf32> to vector<1x256xf32>
    %243 = arith.mulf %235, %242 : vector<1x256xf32>
    %244 = arith.addf %231, %243 : vector<1x256xf32>
    %c10_i32 = arith.constant 10 : i32
    %245 = vector.broadcast %c10_i32 : i32 to vector<1x256xi32>
    %246 = arith.cmpi eq, %4, %245 : vector<1x256xi32>
    %247 = arith.extui %246 : vector<1x256xi1> to vector<1x256xi32>
    %248 = arith.sitofp %247 : vector<1x256xi32> to vector<1x256xf32>
    %249 = vector.extract_strided_slice %1 {offsets = [8, 10], sizes = [8, 1], strides = [1, 1]} : vector<32x12xf32> to vector<8x1xf32>
    %250 = vector.broadcast %248 : vector<1x256xf32> to vector<8x256xf32>
    %251 = vector.broadcast %249 : vector<8x1xf32> to vector<8x256xf32>
    %252 = arith.mulf %250, %251 : vector<8x256xf32>
    %253 = arith.addf %240, %252 : vector<8x256xf32>
    %254 = vector.extract_strided_slice %2 {offsets = [0, 10], sizes = [1, 1], strides = [1, 1]} : vector<1x36xf32> to vector<1x1xf32>
    %255 = vector.broadcast %254 : vector<1x1xf32> to vector<1x256xf32>
    %256 = arith.mulf %248, %255 : vector<1x256xf32>
    %257 = arith.addf %244, %256 : vector<1x256xf32>
    %c11_i32 = arith.constant 11 : i32
    %258 = vector.broadcast %c11_i32 : i32 to vector<1x256xi32>
    %259 = arith.cmpi eq, %4, %258 : vector<1x256xi32>
    %260 = arith.extui %259 : vector<1x256xi1> to vector<1x256xi32>
    %261 = arith.sitofp %260 : vector<1x256xi32> to vector<1x256xf32>
    %262 = vector.extract_strided_slice %1 {offsets = [8, 11], sizes = [8, 1], strides = [1, 1]} : vector<32x12xf32> to vector<8x1xf32>
    %263 = vector.broadcast %261 : vector<1x256xf32> to vector<8x256xf32>
    %264 = vector.broadcast %262 : vector<8x1xf32> to vector<8x256xf32>
    %265 = arith.mulf %263, %264 : vector<8x256xf32>
    %266 = arith.addf %253, %265 : vector<8x256xf32>
    %267 = vector.extract_strided_slice %2 {offsets = [0, 11], sizes = [1, 1], strides = [1, 1]} : vector<1x36xf32> to vector<1x1xf32>
    %268 = vector.broadcast %267 : vector<1x1xf32> to vector<1x256xf32>
    %269 = arith.mulf %261, %268 : vector<1x256xf32>
    %270 = arith.addf %257, %269 : vector<1x256xf32>
    %cst_16 = arith.constant 0.000000e+00 : f32
    %271 = vector.broadcast %cst_16 : f32 to vector<8x256xf32>
    %cst_17 = arith.constant 0.000000e+00 : f32
    %272 = vector.broadcast %cst_17 : f32 to vector<1x256xf32>
    %c0_i32_18 = arith.constant 0 : i32
    %273 = vector.broadcast %c0_i32_18 : i32 to vector<1x256xi32>
    %274 = arith.cmpi eq, %5, %273 : vector<1x256xi32>
    %275 = arith.extui %274 : vector<1x256xi1> to vector<1x256xi32>
    %276 = arith.sitofp %275 : vector<1x256xi32> to vector<1x256xf32>
    %277 = vector.extract_strided_slice %1 {offsets = [16, 0], sizes = [8, 1], strides = [1, 1]} : vector<32x12xf32> to vector<8x1xf32>
    %278 = vector.broadcast %276 : vector<1x256xf32> to vector<8x256xf32>
    %279 = vector.broadcast %277 : vector<8x1xf32> to vector<8x256xf32>
    %280 = arith.mulf %278, %279 : vector<8x256xf32>
    %281 = arith.addf %271, %280 : vector<8x256xf32>
    %282 = vector.extract_strided_slice %2 {offsets = [0, 0], sizes = [1, 1], strides = [1, 1]} : vector<1x36xf32> to vector<1x1xf32>
    %283 = vector.broadcast %282 : vector<1x1xf32> to vector<1x256xf32>
    %284 = arith.mulf %276, %283 : vector<1x256xf32>
    %285 = arith.addf %272, %284 : vector<1x256xf32>
    %c1_i32_19 = arith.constant 1 : i32
    %286 = vector.broadcast %c1_i32_19 : i32 to vector<1x256xi32>
    %287 = arith.cmpi eq, %5, %286 : vector<1x256xi32>
    %288 = arith.extui %287 : vector<1x256xi1> to vector<1x256xi32>
    %289 = arith.sitofp %288 : vector<1x256xi32> to vector<1x256xf32>
    %290 = vector.extract_strided_slice %1 {offsets = [16, 1], sizes = [8, 1], strides = [1, 1]} : vector<32x12xf32> to vector<8x1xf32>
    %291 = vector.broadcast %289 : vector<1x256xf32> to vector<8x256xf32>
    %292 = vector.broadcast %290 : vector<8x1xf32> to vector<8x256xf32>
    %293 = arith.mulf %291, %292 : vector<8x256xf32>
    %294 = arith.addf %281, %293 : vector<8x256xf32>
    %295 = vector.extract_strided_slice %2 {offsets = [0, 1], sizes = [1, 1], strides = [1, 1]} : vector<1x36xf32> to vector<1x1xf32>
    %296 = vector.broadcast %295 : vector<1x1xf32> to vector<1x256xf32>
    %297 = arith.mulf %289, %296 : vector<1x256xf32>
    %298 = arith.addf %285, %297 : vector<1x256xf32>
    %c2_i32_20 = arith.constant 2 : i32
    %299 = vector.broadcast %c2_i32_20 : i32 to vector<1x256xi32>
    %300 = arith.cmpi eq, %5, %299 : vector<1x256xi32>
    %301 = arith.extui %300 : vector<1x256xi1> to vector<1x256xi32>
    %302 = arith.sitofp %301 : vector<1x256xi32> to vector<1x256xf32>
    %303 = vector.extract_strided_slice %1 {offsets = [16, 2], sizes = [8, 1], strides = [1, 1]} : vector<32x12xf32> to vector<8x1xf32>
    %304 = vector.broadcast %302 : vector<1x256xf32> to vector<8x256xf32>
    %305 = vector.broadcast %303 : vector<8x1xf32> to vector<8x256xf32>
    %306 = arith.mulf %304, %305 : vector<8x256xf32>
    %307 = arith.addf %294, %306 : vector<8x256xf32>
    %308 = vector.extract_strided_slice %2 {offsets = [0, 2], sizes = [1, 1], strides = [1, 1]} : vector<1x36xf32> to vector<1x1xf32>
    %309 = vector.broadcast %308 : vector<1x1xf32> to vector<1x256xf32>
    %310 = arith.mulf %302, %309 : vector<1x256xf32>
    %311 = arith.addf %298, %310 : vector<1x256xf32>
    %c3_i32_21 = arith.constant 3 : i32
    %312 = vector.broadcast %c3_i32_21 : i32 to vector<1x256xi32>
    %313 = arith.cmpi eq, %5, %312 : vector<1x256xi32>
    %314 = arith.extui %313 : vector<1x256xi1> to vector<1x256xi32>
    %315 = arith.sitofp %314 : vector<1x256xi32> to vector<1x256xf32>
    %316 = vector.extract_strided_slice %1 {offsets = [16, 3], sizes = [8, 1], strides = [1, 1]} : vector<32x12xf32> to vector<8x1xf32>
    %317 = vector.broadcast %315 : vector<1x256xf32> to vector<8x256xf32>
    %318 = vector.broadcast %316 : vector<8x1xf32> to vector<8x256xf32>
    %319 = arith.mulf %317, %318 : vector<8x256xf32>
    %320 = arith.addf %307, %319 : vector<8x256xf32>
    %321 = vector.extract_strided_slice %2 {offsets = [0, 3], sizes = [1, 1], strides = [1, 1]} : vector<1x36xf32> to vector<1x1xf32>
    %322 = vector.broadcast %321 : vector<1x1xf32> to vector<1x256xf32>
    %323 = arith.mulf %315, %322 : vector<1x256xf32>
    %324 = arith.addf %311, %323 : vector<1x256xf32>
    %c4_i32_22 = arith.constant 4 : i32
    %325 = vector.broadcast %c4_i32_22 : i32 to vector<1x256xi32>
    %326 = arith.cmpi eq, %5, %325 : vector<1x256xi32>
    %327 = arith.extui %326 : vector<1x256xi1> to vector<1x256xi32>
    %328 = arith.sitofp %327 : vector<1x256xi32> to vector<1x256xf32>
    %329 = vector.extract_strided_slice %1 {offsets = [16, 4], sizes = [8, 1], strides = [1, 1]} : vector<32x12xf32> to vector<8x1xf32>
    %330 = vector.broadcast %328 : vector<1x256xf32> to vector<8x256xf32>
    %331 = vector.broadcast %329 : vector<8x1xf32> to vector<8x256xf32>
    %332 = arith.mulf %330, %331 : vector<8x256xf32>
    %333 = arith.addf %320, %332 : vector<8x256xf32>
    %334 = vector.extract_strided_slice %2 {offsets = [0, 4], sizes = [1, 1], strides = [1, 1]} : vector<1x36xf32> to vector<1x1xf32>
    %335 = vector.broadcast %334 : vector<1x1xf32> to vector<1x256xf32>
    %336 = arith.mulf %328, %335 : vector<1x256xf32>
    %337 = arith.addf %324, %336 : vector<1x256xf32>
    %c5_i32_23 = arith.constant 5 : i32
    %338 = vector.broadcast %c5_i32_23 : i32 to vector<1x256xi32>
    %339 = arith.cmpi eq, %5, %338 : vector<1x256xi32>
    %340 = arith.extui %339 : vector<1x256xi1> to vector<1x256xi32>
    %341 = arith.sitofp %340 : vector<1x256xi32> to vector<1x256xf32>
    %342 = vector.extract_strided_slice %1 {offsets = [16, 5], sizes = [8, 1], strides = [1, 1]} : vector<32x12xf32> to vector<8x1xf32>
    %343 = vector.broadcast %341 : vector<1x256xf32> to vector<8x256xf32>
    %344 = vector.broadcast %342 : vector<8x1xf32> to vector<8x256xf32>
    %345 = arith.mulf %343, %344 : vector<8x256xf32>
    %346 = arith.addf %333, %345 : vector<8x256xf32>
    %347 = vector.extract_strided_slice %2 {offsets = [0, 5], sizes = [1, 1], strides = [1, 1]} : vector<1x36xf32> to vector<1x1xf32>
    %348 = vector.broadcast %347 : vector<1x1xf32> to vector<1x256xf32>
    %349 = arith.mulf %341, %348 : vector<1x256xf32>
    %350 = arith.addf %337, %349 : vector<1x256xf32>
    %cst_24 = arith.constant 0.000000e+00 : f32
    %351 = vector.broadcast %cst_24 : f32 to vector<8x256xf32>
    %cst_25 = arith.constant 0.000000e+00 : f32
    %352 = vector.broadcast %cst_25 : f32 to vector<1x256xf32>
    %c0_i32_26 = arith.constant 0 : i32
    %353 = vector.broadcast %c0_i32_26 : i32 to vector<1x256xi32>
    %354 = arith.cmpi eq, %6, %353 : vector<1x256xi32>
    %355 = arith.extui %354 : vector<1x256xi1> to vector<1x256xi32>
    %356 = arith.sitofp %355 : vector<1x256xi32> to vector<1x256xf32>
    %357 = vector.extract_strided_slice %1 {offsets = [24, 0], sizes = [8, 1], strides = [1, 1]} : vector<32x12xf32> to vector<8x1xf32>
    %358 = vector.broadcast %356 : vector<1x256xf32> to vector<8x256xf32>
    %359 = vector.broadcast %357 : vector<8x1xf32> to vector<8x256xf32>
    %360 = arith.mulf %358, %359 : vector<8x256xf32>
    %361 = arith.addf %351, %360 : vector<8x256xf32>
    %362 = vector.extract_strided_slice %2 {offsets = [0, 0], sizes = [1, 1], strides = [1, 1]} : vector<1x36xf32> to vector<1x1xf32>
    %363 = vector.broadcast %362 : vector<1x1xf32> to vector<1x256xf32>
    %364 = arith.mulf %356, %363 : vector<1x256xf32>
    %365 = arith.addf %352, %364 : vector<1x256xf32>
    %c1_i32_27 = arith.constant 1 : i32
    %366 = vector.broadcast %c1_i32_27 : i32 to vector<1x256xi32>
    %367 = arith.cmpi eq, %6, %366 : vector<1x256xi32>
    %368 = arith.extui %367 : vector<1x256xi1> to vector<1x256xi32>
    %369 = arith.sitofp %368 : vector<1x256xi32> to vector<1x256xf32>
    %370 = vector.extract_strided_slice %1 {offsets = [24, 1], sizes = [8, 1], strides = [1, 1]} : vector<32x12xf32> to vector<8x1xf32>
    %371 = vector.broadcast %369 : vector<1x256xf32> to vector<8x256xf32>
    %372 = vector.broadcast %370 : vector<8x1xf32> to vector<8x256xf32>
    %373 = arith.mulf %371, %372 : vector<8x256xf32>
    %374 = arith.addf %361, %373 : vector<8x256xf32>
    %375 = vector.extract_strided_slice %2 {offsets = [0, 1], sizes = [1, 1], strides = [1, 1]} : vector<1x36xf32> to vector<1x1xf32>
    %376 = vector.broadcast %375 : vector<1x1xf32> to vector<1x256xf32>
    %377 = arith.mulf %369, %376 : vector<1x256xf32>
    %378 = arith.addf %365, %377 : vector<1x256xf32>
    %c2_i32_28 = arith.constant 2 : i32
    %379 = vector.broadcast %c2_i32_28 : i32 to vector<1x256xi32>
    %380 = arith.cmpi eq, %6, %379 : vector<1x256xi32>
    %381 = arith.extui %380 : vector<1x256xi1> to vector<1x256xi32>
    %382 = arith.sitofp %381 : vector<1x256xi32> to vector<1x256xf32>
    %383 = vector.extract_strided_slice %1 {offsets = [24, 2], sizes = [8, 1], strides = [1, 1]} : vector<32x12xf32> to vector<8x1xf32>
    %384 = vector.broadcast %382 : vector<1x256xf32> to vector<8x256xf32>
    %385 = vector.broadcast %383 : vector<8x1xf32> to vector<8x256xf32>
    %386 = arith.mulf %384, %385 : vector<8x256xf32>
    %387 = arith.addf %374, %386 : vector<8x256xf32>
    %388 = vector.extract_strided_slice %2 {offsets = [0, 2], sizes = [1, 1], strides = [1, 1]} : vector<1x36xf32> to vector<1x1xf32>
    %389 = vector.broadcast %388 : vector<1x1xf32> to vector<1x256xf32>
    %390 = arith.mulf %382, %389 : vector<1x256xf32>
    %391 = arith.addf %378, %390 : vector<1x256xf32>
    %c3_i32_29 = arith.constant 3 : i32
    %392 = vector.broadcast %c3_i32_29 : i32 to vector<1x256xi32>
    %393 = arith.cmpi eq, %6, %392 : vector<1x256xi32>
    %394 = arith.extui %393 : vector<1x256xi1> to vector<1x256xi32>
    %395 = arith.sitofp %394 : vector<1x256xi32> to vector<1x256xf32>
    %396 = vector.extract_strided_slice %1 {offsets = [24, 3], sizes = [8, 1], strides = [1, 1]} : vector<32x12xf32> to vector<8x1xf32>
    %397 = vector.broadcast %395 : vector<1x256xf32> to vector<8x256xf32>
    %398 = vector.broadcast %396 : vector<8x1xf32> to vector<8x256xf32>
    %399 = arith.mulf %397, %398 : vector<8x256xf32>
    %400 = arith.addf %387, %399 : vector<8x256xf32>
    %401 = vector.extract_strided_slice %2 {offsets = [0, 3], sizes = [1, 1], strides = [1, 1]} : vector<1x36xf32> to vector<1x1xf32>
    %402 = vector.broadcast %401 : vector<1x1xf32> to vector<1x256xf32>
    %403 = arith.mulf %395, %402 : vector<1x256xf32>
    %404 = arith.addf %391, %403 : vector<1x256xf32>
    %c4_i32_30 = arith.constant 4 : i32
    %405 = vector.broadcast %c4_i32_30 : i32 to vector<1x256xi32>
    %406 = arith.cmpi eq, %6, %405 : vector<1x256xi32>
    %407 = arith.extui %406 : vector<1x256xi1> to vector<1x256xi32>
    %408 = arith.sitofp %407 : vector<1x256xi32> to vector<1x256xf32>
    %409 = vector.extract_strided_slice %1 {offsets = [24, 4], sizes = [8, 1], strides = [1, 1]} : vector<32x12xf32> to vector<8x1xf32>
    %410 = vector.broadcast %408 : vector<1x256xf32> to vector<8x256xf32>
    %411 = vector.broadcast %409 : vector<8x1xf32> to vector<8x256xf32>
    %412 = arith.mulf %410, %411 : vector<8x256xf32>
    %413 = arith.addf %400, %412 : vector<8x256xf32>
    %414 = vector.extract_strided_slice %2 {offsets = [0, 4], sizes = [1, 1], strides = [1, 1]} : vector<1x36xf32> to vector<1x1xf32>
    %415 = vector.broadcast %414 : vector<1x1xf32> to vector<1x256xf32>
    %416 = arith.mulf %408, %415 : vector<1x256xf32>
    %417 = arith.addf %404, %416 : vector<1x256xf32>
    %c5_i32_31 = arith.constant 5 : i32
    %418 = vector.broadcast %c5_i32_31 : i32 to vector<1x256xi32>
    %419 = arith.cmpi eq, %6, %418 : vector<1x256xi32>
    %420 = arith.extui %419 : vector<1x256xi1> to vector<1x256xi32>
    %421 = arith.sitofp %420 : vector<1x256xi32> to vector<1x256xf32>
    %422 = vector.extract_strided_slice %1 {offsets = [24, 5], sizes = [8, 1], strides = [1, 1]} : vector<32x12xf32> to vector<8x1xf32>
    %423 = vector.broadcast %421 : vector<1x256xf32> to vector<8x256xf32>
    %424 = vector.broadcast %422 : vector<8x1xf32> to vector<8x256xf32>
    %425 = arith.mulf %423, %424 : vector<8x256xf32>
    %426 = arith.addf %413, %425 : vector<8x256xf32>
    %427 = vector.extract_strided_slice %2 {offsets = [0, 5], sizes = [1, 1], strides = [1, 1]} : vector<1x36xf32> to vector<1x1xf32>
    %428 = vector.broadcast %427 : vector<1x1xf32> to vector<1x256xf32>
    %429 = arith.mulf %421, %428 : vector<1x256xf32>
    %430 = arith.addf %417, %429 : vector<1x256xf32>
    %c6_i32_32 = arith.constant 6 : i32
    %431 = vector.broadcast %c6_i32_32 : i32 to vector<1x256xi32>
    %432 = arith.cmpi eq, %6, %431 : vector<1x256xi32>
    %433 = arith.extui %432 : vector<1x256xi1> to vector<1x256xi32>
    %434 = arith.sitofp %433 : vector<1x256xi32> to vector<1x256xf32>
    %435 = vector.extract_strided_slice %1 {offsets = [24, 6], sizes = [8, 1], strides = [1, 1]} : vector<32x12xf32> to vector<8x1xf32>
    %436 = vector.broadcast %434 : vector<1x256xf32> to vector<8x256xf32>
    %437 = vector.broadcast %435 : vector<8x1xf32> to vector<8x256xf32>
    %438 = arith.mulf %436, %437 : vector<8x256xf32>
    %439 = arith.addf %426, %438 : vector<8x256xf32>
    %440 = vector.extract_strided_slice %2 {offsets = [0, 6], sizes = [1, 1], strides = [1, 1]} : vector<1x36xf32> to vector<1x1xf32>
    %441 = vector.broadcast %440 : vector<1x1xf32> to vector<1x256xf32>
    %442 = arith.mulf %434, %441 : vector<1x256xf32>
    %443 = arith.addf %430, %442 : vector<1x256xf32>
    %c7_i32_33 = arith.constant 7 : i32
    %444 = vector.broadcast %c7_i32_33 : i32 to vector<1x256xi32>
    %445 = arith.cmpi eq, %6, %444 : vector<1x256xi32>
    %446 = arith.extui %445 : vector<1x256xi1> to vector<1x256xi32>
    %447 = arith.sitofp %446 : vector<1x256xi32> to vector<1x256xf32>
    %448 = vector.extract_strided_slice %1 {offsets = [24, 7], sizes = [8, 1], strides = [1, 1]} : vector<32x12xf32> to vector<8x1xf32>
    %449 = vector.broadcast %447 : vector<1x256xf32> to vector<8x256xf32>
    %450 = vector.broadcast %448 : vector<8x1xf32> to vector<8x256xf32>
    %451 = arith.mulf %449, %450 : vector<8x256xf32>
    %452 = arith.addf %439, %451 : vector<8x256xf32>
    %453 = vector.extract_strided_slice %2 {offsets = [0, 7], sizes = [1, 1], strides = [1, 1]} : vector<1x36xf32> to vector<1x1xf32>
    %454 = vector.broadcast %453 : vector<1x1xf32> to vector<1x256xf32>
    %455 = arith.mulf %447, %454 : vector<1x256xf32>
    %456 = arith.addf %443, %455 : vector<1x256xf32>
    %c8_i32_34 = arith.constant 8 : i32
    %457 = vector.broadcast %c8_i32_34 : i32 to vector<1x256xi32>
    %458 = arith.cmpi eq, %6, %457 : vector<1x256xi32>
    %459 = arith.extui %458 : vector<1x256xi1> to vector<1x256xi32>
    %460 = arith.sitofp %459 : vector<1x256xi32> to vector<1x256xf32>
    %461 = vector.extract_strided_slice %1 {offsets = [24, 8], sizes = [8, 1], strides = [1, 1]} : vector<32x12xf32> to vector<8x1xf32>
    %462 = vector.broadcast %460 : vector<1x256xf32> to vector<8x256xf32>
    %463 = vector.broadcast %461 : vector<8x1xf32> to vector<8x256xf32>
    %464 = arith.mulf %462, %463 : vector<8x256xf32>
    %465 = arith.addf %452, %464 : vector<8x256xf32>
    %466 = vector.extract_strided_slice %2 {offsets = [0, 8], sizes = [1, 1], strides = [1, 1]} : vector<1x36xf32> to vector<1x1xf32>
    %467 = vector.broadcast %466 : vector<1x1xf32> to vector<1x256xf32>
    %468 = arith.mulf %460, %467 : vector<1x256xf32>
    %469 = arith.addf %456, %468 : vector<1x256xf32>
    %c9_i32_35 = arith.constant 9 : i32
    %470 = vector.broadcast %c9_i32_35 : i32 to vector<1x256xi32>
    %471 = arith.cmpi eq, %6, %470 : vector<1x256xi32>
    %472 = arith.extui %471 : vector<1x256xi1> to vector<1x256xi32>
    %473 = arith.sitofp %472 : vector<1x256xi32> to vector<1x256xf32>
    %474 = vector.extract_strided_slice %1 {offsets = [24, 9], sizes = [8, 1], strides = [1, 1]} : vector<32x12xf32> to vector<8x1xf32>
    %475 = vector.broadcast %473 : vector<1x256xf32> to vector<8x256xf32>
    %476 = vector.broadcast %474 : vector<8x1xf32> to vector<8x256xf32>
    %477 = arith.mulf %475, %476 : vector<8x256xf32>
    %478 = arith.addf %465, %477 : vector<8x256xf32>
    %479 = vector.extract_strided_slice %2 {offsets = [0, 9], sizes = [1, 1], strides = [1, 1]} : vector<1x36xf32> to vector<1x1xf32>
    %480 = vector.broadcast %479 : vector<1x1xf32> to vector<1x256xf32>
    %481 = arith.mulf %473, %480 : vector<1x256xf32>
    %482 = arith.addf %469, %481 : vector<1x256xf32>
    %483 = arith.cmpi eq, %4, %3 : vector<1x256xi32>
    %484 = arith.extui %483 : vector<1x256xi1> to vector<1x256xi32>
    %485 = arith.sitofp %484 : vector<1x256xi32> to vector<1x256xf32>
    %cst_36 = arith.constant 1.000000e+00 : f32
    %486 = vector.broadcast %cst_36 : f32 to vector<1x256xf32>
    %487 = arith.subf %486, %485 : vector<1x256xf32>
    %488 = arith.mulf %487, %270 : vector<1x256xf32>
    %489 = arith.addf %112, %488 : vector<1x256xf32>
    %490 = arith.cmpi eq, %5, %3 : vector<1x256xi32>
    %491 = arith.extui %490 : vector<1x256xi1> to vector<1x256xi32>
    %492 = arith.sitofp %491 : vector<1x256xi32> to vector<1x256xf32>
    %493 = arith.cmpi eq, %5, %4 : vector<1x256xi32>
    %494 = arith.extui %493 : vector<1x256xi1> to vector<1x256xi32>
    %495 = arith.sitofp %494 : vector<1x256xi32> to vector<1x256xf32>
    %496 = arith.maximumf %492, %495 : vector<1x256xf32>
    %cst_37 = arith.constant 1.000000e+00 : f32
    %497 = vector.broadcast %cst_37 : f32 to vector<1x256xf32>
    %498 = arith.subf %497, %496 : vector<1x256xf32>
    %499 = arith.mulf %498, %350 : vector<1x256xf32>
    %500 = arith.addf %489, %499 : vector<1x256xf32>
    %501 = arith.cmpi eq, %6, %3 : vector<1x256xi32>
    %502 = arith.extui %501 : vector<1x256xi1> to vector<1x256xi32>
    %503 = arith.sitofp %502 : vector<1x256xi32> to vector<1x256xf32>
    %504 = arith.cmpi eq, %6, %4 : vector<1x256xi32>
    %505 = arith.extui %504 : vector<1x256xi1> to vector<1x256xi32>
    %506 = arith.sitofp %505 : vector<1x256xi32> to vector<1x256xf32>
    %507 = arith.maximumf %503, %506 : vector<1x256xf32>
    %508 = arith.cmpi eq, %6, %5 : vector<1x256xi32>
    %509 = arith.extui %508 : vector<1x256xi1> to vector<1x256xi32>
    %510 = arith.sitofp %509 : vector<1x256xi32> to vector<1x256xf32>
    %511 = arith.maximumf %507, %510 : vector<1x256xf32>
    %cst_38 = arith.constant 1.000000e+00 : f32
    %512 = vector.broadcast %cst_38 : f32 to vector<1x256xf32>
    %513 = arith.subf %512, %511 : vector<1x256xf32>
    %514 = arith.mulf %513, %482 : vector<1x256xf32>
    %515 = arith.addf %500, %514 : vector<1x256xf32>
    %c0_39 = arith.constant 0 : index
    %c0_40 = arith.constant 0 : index
    %516 = vector.load %arg4[%c0_39, %c0_40] : memref<1x1xf32, #tpu.memory_space<vmem>>, vector<1x1xf32>
    %517 = vector.broadcast %516 : vector<1x1xf32> to vector<1x256xf32>
    %518 = arith.addf %515, %517 : vector<1x256xf32>
    %519 = arith.mulf %108, %108 : vector<8x256xf32>
    %520 = arith.addf %108, %266 : vector<8x256xf32>
    %521 = arith.mulf %266, %266 : vector<8x256xf32>
    %522 = arith.addf %519, %521 : vector<8x256xf32>
    %523 = arith.addf %520, %346 : vector<8x256xf32>
    %524 = arith.mulf %346, %346 : vector<8x256xf32>
    %525 = arith.addf %522, %524 : vector<8x256xf32>
    %526 = arith.addf %523, %478 : vector<8x256xf32>
    %527 = arith.mulf %478, %478 : vector<8x256xf32>
    %528 = arith.addf %525, %527 : vector<8x256xf32>
    %529 = arith.mulf %526, %526 : vector<8x256xf32>
    %cst_41 = arith.constant dense<0.000000e+00> : vector<256xf32>
    %530 = vector.multi_reduction <add>, %529, %cst_41 [0] : vector<8x256xf32> to vector<256xf32>
    %531 = vector.shape_cast %530 : vector<256xf32> to vector<1x256xf32>
    %cst_42 = arith.constant dense<0.000000e+00> : vector<256xf32>
    %532 = vector.multi_reduction <add>, %528, %cst_42 [0] : vector<8x256xf32> to vector<256xf32>
    %533 = vector.shape_cast %532 : vector<256xf32> to vector<1x256xf32>
    %534 = arith.subf %531, %533 : vector<1x256xf32>
    %cst_43 = arith.constant 5.000000e-01 : f32
    %535 = vector.broadcast %cst_43 : f32 to vector<1x256xf32>
    %536 = arith.mulf %535, %534 : vector<1x256xf32>
    %537 = tpu.concatenate %108, %266, %346, %478 in 0 : vector<8x256xf32>, vector<8x256xf32>, vector<8x256xf32>, vector<8x256xf32> -> vector<32x256xf32>
    %538 = arith.truncf %537 : vector<32x256xf32> to vector<32x256xbf16>
    %c0_44 = arith.constant 0 : index
    %c0_45 = arith.constant 0 : index
    %539 = vector.load %arg5[%c0_44, %c0_45] : memref<32x32xbf16, #tpu.memory_space<vmem>>, vector<32x32xbf16>
    %cst_46 = arith.constant dense<0.000000e+00> : vector<32x256xf32>
    %540 = tpu.matmul %539, %538, %cst_46 {dimension_numbers = #tpu.dot_dimension_numbers<[1], [0], [0], [1], [0, 0, 1, 1], [], []>} : vector<32x32xbf16>, vector<32x256xbf16>, vector<32x256xf32> -> vector<32x256xf32>
    %c0_47 = arith.constant 0 : index
    %c0_48 = arith.constant 0 : index
    %541 = vector.load %arg6[%c0_47, %c0_48] : memref<32x1xf32, #tpu.memory_space<vmem>>, vector<32x1xf32>
    %542 = vector.broadcast %541 : vector<32x1xf32> to vector<32x256xf32>
    %543 = arith.addf %540, %542 : vector<32x256xf32>
    %cst_49 = arith.constant 0.000000e+00 : f32
    %544 = vector.broadcast %cst_49 : f32 to vector<32x256xf32>
    %545 = arith.maximumf %543, %544 : vector<32x256xf32>
    %c0_50 = arith.constant 0 : index
    %c0_51 = arith.constant 0 : index
    %546 = vector.load %arg7[%c0_50, %c0_51] : memref<16x32xbf16, #tpu.memory_space<vmem>>, vector<16x32xbf16>
    %547 = arith.truncf %545 : vector<32x256xf32> to vector<32x256xbf16>
    %cst_52 = arith.constant dense<0.000000e+00> : vector<16x256xf32>
    %548 = tpu.matmul %546, %547, %cst_52 {dimension_numbers = #tpu.dot_dimension_numbers<[1], [0], [0], [1], [0, 0, 1, 1], [], []>} : vector<16x32xbf16>, vector<32x256xbf16>, vector<16x256xf32> -> vector<16x256xf32>
    %c0_53 = arith.constant 0 : index
    %c0_54 = arith.constant 0 : index
    %549 = vector.load %arg8[%c0_53, %c0_54] : memref<16x1xf32, #tpu.memory_space<vmem>>, vector<16x1xf32>
    %550 = vector.broadcast %549 : vector<16x1xf32> to vector<16x256xf32>
    %551 = arith.addf %548, %550 : vector<16x256xf32>
    %cst_55 = arith.constant 0.000000e+00 : f32
    %552 = vector.broadcast %cst_55 : f32 to vector<16x256xf32>
    %553 = arith.maximumf %551, %552 : vector<16x256xf32>
    %c0_56 = arith.constant 0 : index
    %c0_57 = arith.constant 0 : index
    %554 = vector.load %arg9[%c0_56, %c0_57] : memref<16x1xf32, #tpu.memory_space<vmem>>, vector<16x1xf32>
    %555 = vector.broadcast %554 : vector<16x1xf32> to vector<16x256xf32>
    %556 = arith.mulf %553, %555 : vector<16x256xf32>
    %cst_58 = arith.constant dense<0.000000e+00> : vector<256xf32>
    %557 = vector.multi_reduction <add>, %556, %cst_58 [0] : vector<16x256xf32> to vector<256xf32>
    %558 = vector.shape_cast %557 : vector<256xf32> to vector<1x256xf32>
    %559 = arith.addf %536, %558 : vector<1x256xf32>
    %560 = arith.addf %559, %518 : vector<1x256xf32>
    %c0_59 = arith.constant 0 : index
    %c0_60 = arith.constant 0 : index
    %561 = vector.load %arg10[%c0_59, %c0_60] : memref<1x256xf32, #tpu.memory_space<vmem>>, vector<1x256xf32>
    tpu.vector_store %arg10[%c0_59, %c0_60], %560 {strides = array<i32>} : memref<1x256xf32, #tpu.memory_space<vmem>>, vector<1x256xf32>,
    return
  }
  func.func @transform_0(%arg0: i32) -> (i32, i32) {
    %c0_i32 = arith.constant 0 : i32
    %c0_i32_0 = arith.constant 0 : i32
    return %c0_i32, %arg0 : i32, i32
  }
  func.func @transform_1(%arg0: i32) -> (i32, i32) {
    %c0_i32 = arith.constant 0 : i32
    %c0_i32_0 = arith.constant 0 : i32
    %c0_i32_1 = arith.constant 0 : i32
    return %c0_i32, %c0_i32_0 : i32, i32
  }
  func.func @transform_2(%arg0: i32) -> (i32, i32) {
    %c0_i32 = arith.constant 0 : i32
    %c0_i32_0 = arith.constant 0 : i32
    %c0_i32_1 = arith.constant 0 : i32
    return %c0_i32, %c0_i32_0 : i32, i32
  }
  func.func @transform_3(%arg0: i32) -> (i32, i32) {
    %c0_i32 = arith.constant 0 : i32
    %c0_i32_0 = arith.constant 0 : i32
    %c0_i32_1 = arith.constant 0 : i32
    return %c0_i32, %c0_i32_0 : i32, i32
  }
  func.func @transform_4(%arg0: i32) -> (i32, i32) {
    %c0_i32 = arith.constant 0 : i32
    %c0_i32_0 = arith.constant 0 : i32
    %c0_i32_1 = arith.constant 0 : i32
    return %c0_i32, %c0_i32_0 : i32, i32
  }
  func.func @transform_5(%arg0: i32) -> (i32, i32) {
    %c0_i32 = arith.constant 0 : i32
    %c0_i32_0 = arith.constant 0 : i32
    %c0_i32_1 = arith.constant 0 : i32
    return %c0_i32, %c0_i32_0 : i32, i32
  }
  func.func @transform_6(%arg0: i32) -> (i32, i32) {
    %c0_i32 = arith.constant 0 : i32
    %c0_i32_0 = arith.constant 0 : i32
    %c0_i32_1 = arith.constant 0 : i32
    return %c0_i32, %c0_i32_0 : i32, i32
  }
  func.func @transform_7(%arg0: i32) -> (i32, i32) {
    %c0_i32 = arith.constant 0 : i32
    %c0_i32_0 = arith.constant 0 : i32
    %c0_i32_1 = arith.constant 0 : i32
    return %c0_i32, %c0_i32_0 : i32, i32
  }
  func.func @transform_8(%arg0: i32) -> (i32, i32) {
    %c0_i32 = arith.constant 0 : i32
    %c0_i32_0 = arith.constant 0 : i32
    %c0_i32_1 = arith.constant 0 : i32
    return %c0_i32, %c0_i32_0 : i32, i32
  }
  func.func @transform_9(%arg0: i32) -> (i32, i32) {
    %c0_i32 = arith.constant 0 : i32
    %c0_i32_0 = arith.constant 0 : i32
    return %c0_i32, %arg0 : i32, i32
  }
}

</mosaic_0001>

<bundles_post_ra>
// kernel: deepffm_forward.1
= control target key start
LH: loop header
LB: loop body
LE: loop exit
PB: predicated region body
PF: predicated region fallthrough
CT: control target
= control target key end

     0   :  { %s2032_s11 = smov 0   ;;  %s2840_s0 = inlined_call_operand.vmem [shape: s32[4,512], index: 0, kind: input, shape index: {}]   ;;  %s2841_s1 = inlined_call_operand.vmem [shape: f32[32,12], index: 1, kind: input, shape index: {}]   ;;  %s2842_s2 = inlined_call_operand.vmem [shape: f32[1,36], index: 2, kind: input, shape index: {}]   ;;  %s2843_s3 = inlined_call_operand.<no memory space> [shape: f32[1,1], index: 3, kind: input, shape index: {}]   ;;  %s2844_s4 = inlined_call_operand.vmem [shape: bf16[32,32], index: 4, kind: input, shape index: {}]   ;;  %s2845_s5 = inlined_call_operand.vmem [shape: f32[32,1], index: 5, kind: input, shape index: {}]   ;;  %s2846_s6 = inlined_call_operand.vmem [shape: bf16[16,32], index: 6, kind: input, shape index: {}]   ;;  %s2847_s7 = inlined_call_operand.vmem [shape: f32[16,1], index: 7, kind: input, shape index: {}]   ;;  %s2848_s8 = inlined_call_operand.vmem [shape: f32[16,1], index: 8, kind: input, shape index: {}]   ;;  %s2849_s9 = inlined_call_operand.vmem [shape: f32[1,512], index: 9, kind: output, shape index: {}]  }
   0x1   :  { %v14_v0 = vstv %s2843_s3 }
   0x2   :  { %15 = vst [vmem:[#allocation2] sm:$0x1] %v14_v0 }
   0x3 LB: > { %s1850_s12 = sadd.s32 4294967295, %s1963_s11   ;;  %p1854_p0 = scmp.ge.s32.totalorder %s1963_s11, 1  ;;  %s1963_s11 = sphi %s2032_s11, %s21_s11  }
   0x4   : > { %p290_p1 = scmp.lt.s32.totalorder %s1963_s11, 3 }
   0x6   : > { %p291_p2 = pnand %p1854_p0, %p290_p1 }
   0x8   : > { %294 = sbr.rel (%p291_p2) target bundleno = 745 (0x2e9), region = 56 }
   0xf   : > { %v2043_v1 = vld [vmem:[%s2841_s1 + $0x8] sm:$0xff]  ;;  %v1965_v2 = vmov 2   ;;  %v2855_v3 = vmov 0   ;;  %v2052_v4 = vld [vmem:[%s2841_s1] sm:$0xff]  ;;  %v1967_v5 = vmov 3   ;;  %v2062_v6 = vld [vmem:[%s2841_s1 + $0x18] sm:$0xff]  ;;  %v2850_v28 = vlaneseq }
  0x10   : > { %1907 = vset.pattern.permute.xlu1 %v1965_v2  ;;  %1906 = vset.pattern.permute.xlu0 %v2855_v3  ;;  %v1968_v7 = vmov 4   ;;  %v1969_v8 = vmov 1   ;;  %v1970_v9 = vmov 5   ;;  %v1971_v10 = vmov 6   ;;  %v340_v11 = vld [vmem:[%s2841_s1 + $0x10] sm:$0xff]  ;;  %v1558_v18 = vld [vmem:[%s2845_s5 + $0x8] sm:$0xff] }
  0x11   : > { %737 = vperm.xlu1 %1907, %v2043_v1   ;;  %685 = vperm.xlu0 %1906, %v2043_v1   ;;  %v1972_v12 = vmov 7   ;;  %v1973_v13 = vmov 10   ;;  %v1974_v14 = vmov 8   ;;  %v1975_v15 = vmov 9   ;;  %v1557_v19 = vld [vmem:[%s2845_s5] sm:$0xff]  ;;  %s1855_s24 = sshll.u32 %s1850_s12, 1 }
  0x12   : > { %1630 = vmatprep.mubr.bf16.mxu0 %v2855_v3  ;;  %1717 = vmatprep.mubr.bf16.mxu1 %v2855_v3  ;;  %v1976_v16 = vmov 11   ;;  %v1559_v20 = vld [vmem:[%s2845_s5 + $0x10] sm:$0xff]  ;;  %v1560_v22 = vld [vmem:[%s2845_s5 + $0x18] sm:$0xff]  ;;  %p326_p3 = scmp.lt.s32.totalorder %s1855_s24, 3  ;;  %v2145_v23 = vld [vmem:[%s2842_s2] sm:$0x1] }
  0x13   : > { %v2178_v31 = vshrl.u32 %v2850_v28, 7  ;;  %v2851_v36 = vmov 0.0   ;;  %v1488_v63 = vld [vmem:[#allocation2] sm:$0x1]  ;;  %vm1591_vm12 = vcmask 261120  }
  0x14   : > { %s3001_s24 = smov (!%p326_p3, %s1855_s24), 3 }
  0x15   : > { %1908 = vset.pattern.permute.xlu1 %v1967_v5  ;;  %367 = vperm.xlu0 %1906, %v2052_v4   ;;  %s1856_s10 = sshll.u32 %s3001_s24, 2  ;;  %2893 = vst [vmem:[#allocation4_spill] sm:$0xff] %v2178_v31  ;;  %v2190_v34 = vsub.s32 1, %v2178_v31  ;;  %v2193_v35 = vsub.s32 5, %v2178_v31  ;;  %v2208_v40 = vsub.s32 0, %v2178_v31  ;;  %v2211_v41 = vsub.s32 4, %v2178_v31 }
  0x16   : > { %763 = vperm.xlu1 %1908, %v2043_v1   ;;  %s2167_s14 = scalar_lea.vmem %s2840_s0, %s1856_s10  ;;  %v2239_v51 = vsub.s32 3, %v2178_v31  ;;  %v2242_v52 = vsub.s32 7, %v2178_v31  ;;  %s334_s10 = scalar_lea.vmem %s2849_s9, %s3001_s24 }
  0x17   : > { %v2174_v30 = vld [vmem:[%s2167_s14] sm:$0xff]  ;;  %2898 = vst [vmem:[#allocation9_spill] sm:$0xff] %v2208_v40  ;;  %2899 = vst [vmem:[#allocation10_spill] sm:$0xff] %v2211_v41 }
  0x18   : > { %2892 = vst [vmem:[#allocation3_spill] sm:$0xff] %v2174_v30  ;;  %vm425_vm0 = vcmp.eq.s32.totalorder %v2174_v30, 2  ;;  %vm465_vm1 = vcmp.eq.s32.totalorder %v2174_v30, 3  ;;  %vm343_vm2 = vcmp.eq.s32.totalorder %v2174_v30, 0  ;;  %vm505_vm3 = vcmp.eq.s32.totalorder %v2174_v30, 4  ;;  %2903 = vst [vmem:[#allocation14_spill] sm:$0xff] %v2239_v51 }
  0x19   : > { %1211 = vperm.xlu0 %1906, %v2062_v6   ;;  %v2197_v37 = vsel %vm425_vm0, 1.0, %v2851_v36  ;;  %v2202_v38 = vsel %vm465_vm1, 1.0, %v2851_v36  ;;  %v2218_v44 = vsel %vm343_vm2, 1.0, %v2851_v36  ;;  %vm385_vm4 = vcmp.eq.s32.totalorder %v2174_v30, 1  ;;  %2904 = vst [vmem:[#allocation15_spill] sm:$0xff] %v2242_v52 }
  0x1a   : > { %1909 = vset.pattern.permute.xlu1 %v1968_v7  ;;  %2896 = vst [vmem:[#allocation7_spill] sm:$0xff] %v2197_v37  ;;  %2897 = vst [vmem:[#allocation8_spill] sm:$0xff] %v2202_v38  ;;  %v721_v42 = vrot.slane %v2197_v37, %v2190_v34  ;;  %v725_v43 = vrot.slane %v2197_v37, %v2193_v35  ;;  %v668_v46 = vrot.slane %v2218_v44, %v2190_v34 }
  0x1b   : > { %789 = vperm.xlu1 %1909, %v2043_v1   ;;  %2900 = vst [vmem:[#allocation11_spill] sm:$0xff] %v2218_v44  ;;  %v672_v47 = vrot.slane %v2218_v44, %v2193_v35  ;;  %v747_v48 = vrot.slane %v2202_v38, %v2190_v34  ;;  %v751_v49 = vrot.slane %v2202_v38, %v2193_v35  ;;  %v2236_v50 = vsel %vm505_vm3, 1.0, %v2851_v36 }
  0x1c   : > { %2902 = vst [vmem:[#allocation13_spill] sm:$0xff] %v2236_v50  ;;  %vm545_vm5 = vcmp.eq.s32.totalorder %v2174_v30, 5  ;;  %v2247_v53 = vrot.slane %v721_v42, %v2190_v34  ;;  %v2250_v54 = vrot.slane %v725_v43, %v2190_v34  ;;  %v350_v55 = vrot.slane %v2218_v44, %v2208_v40 }
  0x1d   : > { %1913 = vset.pattern.permute.xlu0 %v1965_v2  ;;  %v354_v56 = vrot.slane %v2218_v44, %v2211_v41  ;;  %v2259_v58 = vrot.slane %v668_v46, %v2190_v34  ;;  %v2262_v59 = vrot.slane %v672_v47, %v2190_v34  ;;  %v2265_v60 = vrot.slane %v747_v48, %v2190_v34 }
  0x1e   : > { %448 = vperm.xlu0 %1913, %v2052_v4   ;;  %v2268_v61 = vsel %vm385_vm4, 1.0, %v2851_v36  ;;  %v2274_v0 = vrot.slane %v751_v49, %v2190_v34  ;;  %vm585_vm6 = vcmp.eq.s32.totalorder %v2174_v30, 6  ;;  %v512_v42 = vrot.slane %v2236_v50, %v2208_v40 }
  0x1f   : > { %1910 = vset.pattern.permute.xlu1 %v1969_v8  ;;  %2906 = vst [vmem:[#allocation17_spill] sm:$0xff] %v2268_v61  ;;  %vm625_vm7 = vcmp.eq.s32.totalorder %v2174_v30, 7  ;;  %v699_v28 = vrot.slane %v2268_v61, %v2193_v35  ;;  %vm874_vm8 = vcmp.eq.s32.totalorder %v2174_v30, 8  ;;  %vm914_vm9 = vcmp.eq.s32.totalorder %v2174_v30, 9 }
  0x20   : > { %408 = vperm.xlu1 %1910, %v2052_v4   ;;  %vm954_vm10 = vcmp.eq.s32.totalorder %v2174_v30, 10  ;;  %vm994_vm11 = vcmp.eq.s32.totalorder %v2174_v30, 11 }
  0x22   : > { %1916 = vset.pattern.permute.xlu0 %v1967_v5 }
  0x23   : > { %488 = vperm.xlu0 %1916, %v2052_v4  }
  0x24   : > { %1911 = vset.pattern.permute.xlu1 %v1970_v9 }
  0x25   : > { %815 = vperm.xlu1 %1911, %v2043_v1  }
  0x27   : > { %1919 = vset.pattern.permute.xlu0 %v1968_v7 }
  0x28   : > { %528 = vperm.xlu0 %1919, %v2052_v4  }
  0x29   : > { %1912 = vset.pattern.permute.xlu1 %v1969_v8 }
  0x2a   : > { %1237 = vperm.xlu1 %1912, %v2062_v6  }
  0x2c   : > { %1922 = vset.pattern.permute.xlu0 %v1970_v9 }
  0x2d   : > { %568 = vperm.xlu0 %1922, %v2052_v4  }
  0x2e   : > { %1914 = vset.pattern.permute.xlu1 %v1971_v10 }
  0x2f   : > { %841 = vperm.xlu1 %1914, %v2043_v1  }
  0x31   : > { %1923 = vset.pattern.permute.xlu0 %v1969_v8 }
  0x32   : > { %711 = vperm.xlu0 %1923, %v2043_v1  }
  0x33   : > { %1915 = vset.pattern.permute.xlu1 %v1965_v2 }
  0x34   : > { %1263 = vperm.xlu1 %1915, %v2062_v6  }
  0x36   : > { %1080 = vperm.xlu0 %1923, %v340_v11  }
  0x38   : > { %1917 = vset.pattern.permute.xlu1 %v1972_v12 }
  0x39   : > { %867 = vperm.xlu1 %1917, %v2043_v1  }
  0x3a   : > { %1928 = vset.pattern.permute.xlu0 %v1973_v13 }
  0x3b   : > { %977 = vperm.xlu0 %1928, %v2043_v1  }
  0x3d   : > { %1918 = vset.pattern.permute.xlu1 %v1967_v5 }
  0x3e   : > { %1289 = vperm.xlu1 %1918, %v2062_v6  }
  0x3f   : > { %1931 = vset.pattern.permute.xlu0 %v1972_v12 }
  0x40   : > { %648 = vperm.xlu0 %1931, %v2052_v4  }
  0x42   : > { %1920 = vset.pattern.permute.xlu1 %v1974_v14 }
  0x43   : > { %897 = vperm.xlu1 %1920, %v2043_v1  }
  0x44   : > { %1393 = vperm.xlu0 %1931, %v2062_v6  }
  0x47   : > { %1921 = vset.pattern.permute.xlu1 %v1968_v7 }
  0x48   : > { %1315 = vperm.xlu1 %1921, %v2062_v6   ;;  %1935 = vset.pattern.permute.xlu0 %v1974_v14 }
  0x49   : > { %1419 = vperm.xlu0 %1935, %v2062_v6  }
  0x4c   : > { %1924 = vset.pattern.permute.xlu1 %v1975_v15 }
  0x4d   : > { %937 = vperm.xlu1 %1924, %v2043_v1   ;;  %1938 = vset.pattern.permute.xlu0 %v2855_v3 }
  0x4e   : > { %1563 = vperm.xlu0 %1938, %v1557_v19  }
  0x51   : > { %1925 = vset.pattern.permute.xlu1 %v2855_v3 }
  0x52   : > { %1054 = vperm.xlu1 %1925, %v340_v11   ;;  %1578 = vperm.xlu0 %1938, %v1560_v22  }
  0x56   : > { %1926 = vset.pattern.permute.xlu1 %v1970_v9  ;;  %1940 = vset.pattern.permute.xlu0 %v1969_v8  ;;  %v436_v8 = vrot.slane %v2197_v37, %v2211_v41 }
  0x57   : > { %1341 = vperm.xlu1 %1926, %v2062_v6   ;;  %416 = vperm.xlu0 %1940, %v2145_v23  }
  0x58   : > { %v2337_v49 = vrot.slane %v436_v8, %v2208_v40  ;;  %v1225_v8 = vrot.slane %v2268_v61, %v2242_v52 }
  0x5b   : > { %1927 = vset.pattern.permute.xlu1 %v1971_v10  ;;  %1943 = vset.pattern.permute.xlu0 %v1968_v7 }
  0x5c   : > { %608 = vperm.xlu1 %1927, %v2052_v4   ;;  %536 = vperm.xlu0 %1943, %v2145_v23   ;;  %v2283_v4 = vsel %vm545_vm5, 1.0, %v2851_v36 }
  0x5d   : > { %2908 = vst [vmem:[#allocation19_spill] sm:$0xff] %v2283_v4 }
  0x60   : > { %1929 = vset.pattern.permute.xlu1 %v1965_v2  ;;  %1946 = vset.pattern.permute.xlu0 %v1972_v12  ;;  %v472_v12 = vrot.slane %v2202_v38, %v2208_v40 }
  0x61   : > { %1106 = vperm.xlu1 %1929, %v340_v11   ;;  %656 = vperm.xlu0 %1946, %v2145_v23  }
  0x65   : > { %1930 = vset.pattern.permute.xlu1 %v1971_v10  ;;  %1949 = vset.pattern.permute.xlu0 %v1973_v13  ;;  %v2305_v13 = vrot.slane %v354_v56, %v2208_v40 }
  0x66   : > { %1367 = vperm.xlu1 %1930, %v2062_v6   ;;  %985 = vperm.xlu0 %1949, %v2145_v23  }
  0x6a   : > { %1932 = vset.pattern.permute.xlu1 %v1976_v16  ;;  %1951 = vset.pattern.permute.xlu0 %v1976_v16  ;;  %v799_v16 = vrot.slane %v2283_v4, %v2190_v34 }
  0x6b   : > { %1017 = vperm.xlu1 %1932, %v2043_v1   ;;  %1025 = vperm.xlu0 %1951, %v2145_v23   ;;  %v773_v1 = vrot.slane %v2236_v50, %v2190_v34 }
  0x6f   : > { %1933 = vset.pattern.permute.xlu1 %v1967_v5  ;;  %1952 = vset.pattern.permute.xlu0 %v2855_v3 }
  0x70   : > { %1132 = vperm.xlu1 %1933, %v340_v11   ;;  %1491 = vperm.xlu0 %1952, %v1488_v63   ;;  %v2352_v63 = vsel %vm585_vm6, 1.0, %v2851_v36  ;;  %v1247_v36 = vrot.slane %v2197_v37, %v2239_v51 }
  0x71   : > { %2914 = vst [vmem:[#allocation25_spill] sm:$0xff] %v2352_v63 }
  0x74   : > { %1934 = vset.pattern.permute.xlu1 %v1968_v7  ;;  %v432_v7 = vrot.slane %v2197_v37, %v2208_v40 }
  0x75   : > { %1158 = vperm.xlu1 %1934, %v340_v11  }
  0x76   : > { %v2334_v48 = vrot.slane %v432_v7, %v2208_v40  ;;  %v2368_v7 = vrot.slane %v512_v42, %v2208_v40  ;;  %v695_v42 = vrot.slane %v2268_v61, %v2190_v34 }
  0x78   : > { %2917 = vst [vmem:[#allocation28_spill] sm:$0xff] %v2368_v7  ;;  %v2462_v7 = vsub.s32 6, %v2178_v31 }
  0x79   : > { %1936 = vset.pattern.permute.xlu1 %v1970_v9 }
  0x7a   : > { %1184 = vperm.xlu1 %1936, %v340_v11   ;;  %v396_v11 = vrot.slane %v2268_v61, %v2211_v41 }
  0x7c   : > { %v2344_v56 = vrot.slane %v396_v11, %v2208_v40  ;;  %v556_v11 = vrot.slane %v2283_v4, %v2211_v41 }
  0x7e   : > { %1937 = vset.pattern.permute.xlu1 %v1975_v15 }
  0x7f   : > { %1445 = vperm.xlu1 %1937, %v2062_v6   ;;  %v1198_v6 = vrot.slane %v2218_v44, %v2242_v52 }
  0x81   : > { %v2331_v47 = vrot.slane %v1198_v6, %v2239_v51 }
  0x83   : > { %1939 = vset.pattern.permute.xlu1 %v2855_v3  ;;  %2912 = vst [vmem:[#allocation23_spill] sm:$0xff] %v2331_v47 }
  0x84   : > { %1568 = vperm.xlu1 %1939, %v1558_v18   ;;  %v2313_v18 = vrot.slane %v773_v1, %v2190_v34 }
  0x88   : > { %1573 = vperm.xlu1 %1939, %v1559_v20   ;;  %v803_v20 = vrot.slane %v2283_v4, %v2193_v35 }
  0x8a   : > { %v2365_v6 = vrot.slane %v803_v20, %v2190_v34 }
  0x8c   : > { %376 = vperm.xlu1 %1939, %v2145_v23   ;;  %2916 = vst [vmem:[#allocation27_spill] sm:$0xff] %v2365_v6 }
  0x90   : > { %v2124_v17 = vpop.permute.xlu1 %737  ;;  %v2147_v24 = vpop.permute.xlu0 %685  ;;  %1941 = vset.pattern.permute.xlu1 %v1965_v2  ;;  %v777_v2 = vrot.slane %v2236_v50, %v2193_v35 }
  0x91   : > { %456 = vperm.xlu1 %1941, %v2145_v23  }
  0x92   : > { %v2316_v19 = vrot.slane %v777_v2, %v2190_v34  ;;  %v2358_v2 = vrot.slane %v799_v16, %v2190_v34 }
  0x94   : > { %v2160_v27 = vpop.permute.xlu0 %367 }
  0x95   : > { %v2137_v21 = vpop.permute.xlu1 %763  ;;  %1942 = vset.pattern.permute.xlu1 %v1967_v5  ;;  %v1194_v5 = vrot.slane %v2218_v44, %v2239_v51 }
  0x96   : > { %496 = vperm.xlu1 %1942, %v2145_v23  }
  0x97   : > { %v2328_v46 = vrot.slane %v1194_v5, %v2239_v51  ;;  %v1221_v5 = vrot.slane %v2268_v61, %v2239_v51 }
  0x98   : > { %v2180_v32 = vpop.permute.xlu0 %1211 }
  0x99   : > { %2894 = vst [vmem:[#allocation5_spill] sm:$0xff] %v2180_v32  ;;  %2911 = vst [vmem:[#allocation22_spill] sm:$0xff] %v2328_v46  ;;  %v1299_v46 = vrot.slane %v2236_v50, %v2239_v51 }
  0x9a   : > { %v2149_v25 = vpop.permute.xlu1 %789  ;;  %1944 = vset.pattern.permute.xlu1 %v1970_v9  ;;  %v2296_v9 = vrot.slane %v350_v55, %v2208_v40 }
  0x9b   : > { %576 = vperm.xlu1 %1944, %v2145_v23  }
  0x9d   : > { %v2204_v39 = vpop.permute.xlu0 %448 }
  0x9e   : > { %v452_v30 = vmul.f32 %v2204_v39, %v2337_v49 }
  0x9f   : > { %v2157_v26 = vpop.permute.xlu1 %408  ;;  %1945 = vset.pattern.permute.xlu1 %v1971_v10  ;;  %v392_v10 = vrot.slane %v2268_v61, %v2208_v40 }
  0xa0   : > { %616 = vperm.xlu1 %1945, %v2145_v23  }
  0xa1   : > { %v2341_v55 = vrot.slane %v392_v10, %v2208_v40  ;;  %v552_v10 = vrot.slane %v2283_v4, %v2208_v40 }
  0xa2   : > { %v2256_v57 = vpop.permute.xlu0 %488 }
  0xa3   : > { %2905 = vst [vmem:[#allocation16_spill] sm:$0xff] %v2256_v57 }
  0xa4   : > { %v2170_v29 = vpop.permute.xlu1 %815  ;;  %1947 = vset.pattern.permute.xlu1 %v1974_v14  ;;  %v476_v14 = vrot.slane %v2202_v38, %v2211_v41 }
  0xa5   : > { %905 = vperm.xlu1 %1947, %v2145_v23  }
  0xa6   : > { %v2355_v1 = vrot.slane %v476_v14, %v2208_v40  ;;  %v829_v14 = vrot.slane %v2352_v63, %v2193_v35 }
  0xa7   : > { %v2320_v22 = vpop.permute.xlu0 %528 }
  0xa8   : > { %2909 = vst [vmem:[#allocation20_spill] sm:$0xff] %v2320_v22  ;;  %2915 = vst [vmem:[#allocation26_spill] sm:$0xff] %v2355_v1 }
  0xa9   : > { %v2186_v33 = vpop.permute.xlu1 %1237  ;;  %1948 = vset.pattern.permute.xlu1 %v1975_v15  ;;  %v2347_v15 = vrot.slane %v472_v12, %v2208_v40  ;;  %v825_v12 = vrot.slane %v2352_v63, %v2190_v34 }
  0xaa   : > { %2895 = vst [vmem:[#allocation6_spill] sm:$0xff] %v2186_v33  ;;  %945 = vperm.xlu1 %1948, %v2145_v23   ;;  %v516_v23 = vrot.slane %v2236_v50, %v2211_v41  ;;  %v2403_v33 = vrot.slane %v1225_v8, %v2239_v51 }
  0xab   : > { %2913 = vst [vmem:[#allocation24_spill] sm:$0xff] %v2347_v15 }
  0xac   : > { %v2384_v20 = vpop.permute.xlu0 %568  ;;  %2922 = vst [vmem:[#allocation33_spill] sm:$0xff] %v2403_v33  ;;  %v709_v33 = vrot.slane %v699_v28, %v2190_v34 }
  0xad   : > { %2919 = vst [vmem:[#allocation30_spill] sm:$0xff] %v2384_v20  ;;  %v2924_v20 = vmov 0.0  }
  0xae   : > { %v2221_v45 = vpop.permute.xlu1 %841  ;;  %1950 = vset.pattern.permute.xlu1 %v2855_v3  ;;  %v1251_v3 = vrot.slane %v2197_v37, %v2242_v52  ;;  %v2409_v47 = vsel %vm625_vm7, 1.0, %v2924_v20  ;;  %v2422_v8 = vsel %vm874_vm8, 1.0, %v2924_v20 }
  0xaf   : > { %2901 = vst [vmem:[#allocation12_spill] sm:$0xff] %v2221_v45  ;;  %2925 = vst [vmem:[#allocation35_spill] sm:$0xff] %v2409_v47 }
  0xb0   : > { %2929 = vst [vmem:[#allocation39_spill] sm:$0xff] %v2422_v8 }
  0xb1   : > { %v712_v28 = vpop.permute.xlu0 %711 }
  0xb2   : > { %v715_v57 = vmul.f32 %v712_v28, %v709_v33 }
  0xb3   : > { %v2270_v62 = vpop.permute.xlu1 %1263 }
  0xb4   : > { %2907 = vst [vmem:[#allocation18_spill] sm:$0xff] %v2270_v62  ;;  %v2394_v62 = vrot.slane %v516_v23, %v2208_v40  ;;  %v2413_v23 = vrot.slane %v556_v11, %v2208_v40  ;;  %v2432_v11 = vsel %vm914_vm9, 1.0, %v2924_v20 }
  0xb5   : > { %2932 = vst [vmem:[#allocation42_spill] sm:$0xff] %v2432_v11  ;;  %v921_v22 = vrot.slane %v2432_v11, %v2190_v34 }
  0xb6   : > { %2920 = vst [vmem:[#allocation31_spill] sm:$0xff] %v2394_v62  ;;  %2926 = vst [vmem:[#allocation36_spill] sm:$0xff] %v2413_v23  ;;  %v855_v23 = vrot.slane %v2409_v47, %v2193_v35  ;;  %v1303_v62 = vrot.slane %v2236_v50, %v2242_v52  ;;  %v689_v50 = vmul.f32 %v2147_v24, %v2262_v59 }
  0xb7   : > { %v2497_v59 = vrot.slane %v1299_v46, %v2239_v51 }
  0xb8   : > { %v2324_v43 = vpop.permute.xlu1 %867 }
  0xb9   : > { %2910 = vst [vmem:[#allocation21_spill] sm:$0xff] %v2324_v43  ;;  %v2406_v43 = vrot.slane %v552_v10, %v2208_v40  ;;  %v705_v10 = vrot.slane %v695_v42, %v2190_v34  ;;  %v2442_v42 = vsel %vm954_vm10, 1.0, %v2924_v20  ;;  %2936 = vst [vmem:[#allocation46_spill] sm:$0xff] %v2497_v59 }
  0xba   : > { %2934 = vst [vmem:[#allocation44_spill] sm:$0xff] %v2442_v42  ;;  %v965_v45 = vrot.slane %v2442_v42, %v2193_v35 }
  0xbb   : > { %2923 = vst [vmem:[#allocation34_spill] sm:$0xff] %v2406_v43  ;;  %v2427_v43 = vrot.slane %v1247_v36, %v2239_v51  ;;  %v1273_v36 = vrot.slane %v2202_v38, %v2239_v51  ;;  %v714_v1 = vmul.f32 %v712_v28, %v705_v10  ;;  %v1068_v10 = vrot.slane %v2268_v61, %v2462_v7 }
  0xbc   : > { %v2514_v46 = vrot.slane %v965_v45, %v2190_v34  ;;  %v741_v45 = vmul.f32 %v2124_v17, %v2250_v54 }
  0xbd   : > { %v2381_v16 = vpop.permute.xlu1 %1289  ;;  %2930 = vst [vmem:[#allocation40_spill] sm:$0xff] %v2427_v43  ;;  %v1277_v43 = vrot.slane %v2202_v38, %v2242_v52  ;;  %v925_v38 = vrot.slane %v2432_v11, %v2193_v35  ;;  %v2480_v11 = vrot.slane %v855_v23, %v2190_v34  ;;  %v2483_v6 = vrot.slane %v1273_v36, %v2239_v51 }
  0xbe   : > { %2918 = vst [vmem:[#allocation29_spill] sm:$0xff] %v2381_v16  ;;  %v2397_v16 = vrot.slane %v1221_v5, %v2239_v51  ;;  %v2416_v5 = vrot.slane %v825_v12, %v2190_v34  ;;  %v2435_v12 = vrot.slane %v1251_v3, %v2239_v51  ;;  %v881_v3 = vrot.slane %v2422_v8, %v2190_v34 }
  0xbf   : > { %v2500_v23 = vrot.slane %v1303_v62, %v2239_v51  ;;  %v717_v36 = vadd.f32 %v715_v57, %v689_v50  ;;  %v1325_v50 = vrot.slane %v2283_v4, %v2239_v51  ;;  %v740_v57 = vmul.f32 %v2124_v17, %v2247_v53 }
  0xc0   : > { %2921 = vst [vmem:[#allocation32_spill] sm:$0xff] %v2397_v16  ;;  %2927 = vst [vmem:[#allocation37_spill] sm:$0xff] %v2416_v5  ;;  %v2419_v16 = vrot.slane %v829_v14, %v2190_v34  ;;  %v851_v14 = vrot.slane %v2409_v47, %v2190_v34  ;;  %v688_v5 = vmul.f32 %v2147_v24, %v2259_v58 }
  0xc1   : > { %2933 = vst [vmem:[#allocation43_spill] sm:$0xff] %v2435_v12  ;;  %v2451_v12 = vsub.s32 2, %v2178_v31  ;;  %v2488_v58 = vrot.slane %v1277_v43, %v2239_v51  ;;  %v2491_v24 = vrot.slane %v881_v3, %v2190_v34  ;;  %2937 = vst [vmem:[#allocation47_spill] sm:$0xff] %v2500_v23  ;;  %v2508_v43 = vrot.slane %v925_v38, %v2190_v34 }
  0xc2   : > { %2928 = vst [vmem:[#allocation38_spill] sm:$0xff] %v2419_v16  ;;  %v2429_v32 = vpop.permute.xlu1 %897  ;;  %v961_v16 = vrot.slane %v2442_v42, %v2190_v34  ;;  %v2477_v31 = vrot.slane %v851_v14, %v2190_v34  ;;  %v2505_v14 = vrot.slane %v921_v22, %v2190_v34  ;;  %v716_v28 = vadd.f32 %v714_v1, %v688_v5 }
  0xc3   : > { %2931 = vst [vmem:[#allocation41_spill] sm:$0xff] %v2429_v32  ;;  %v885_v32 = vrot.slane %v2422_v8, %v2193_v35  ;;  %v1064_v42 = vrot.slane %v2268_v61, %v2451_v12  ;;  %v1037_v22 = vrot.slane %v2218_v44, %v2451_v12  ;;  %v1041_v38 = vrot.slane %v2218_v44, %v2462_v7 }
  0xc4   : > { %v1329_v1 = vrot.slane %v2283_v4, %v2242_v52  ;;  %v596_v5 = vrot.slane %v2352_v63, %v2211_v41  ;;  %v636_v61 = vrot.slane %v2409_v47, %v2211_v41  ;;  %v1090_v53 = vrot.slane %v2197_v37, %v2451_v12 }
  0xc5   : > { %v2494_v33 = vrot.slane %v885_v32, %v2190_v34  ;;  %v2511_v32 = vrot.slane %v961_v16, %v2190_v34  ;;  %v2517_v62 = vrot.slane %v1064_v42, %v2451_v12  ;;  %v592_v16 = vrot.slane %v2352_v63, %v2208_v40 }
  0xc6   : > { %v632_v42 = vrot.slane %v2409_v47, %v2208_v40  ;;  %v742_v44 = vadd.f32 %v740_v57, %v716_v28  ;;  %v743_v17 = vadd.f32 %v741_v45, %v717_v36  ;;  %v2544_v54 = vrot.slane %v1068_v10, %v2451_v12 }
  0xc7   : > { %v2474_v15 = vpop.permute.xlu1 %1315  ;;  %v1094_v23 = vrot.slane %v2197_v37, %v2462_v7  ;;  %v2552_v59 = vrot.slane %v1041_v38, %v2451_v12  ;;  %v2555_v4 = vrot.slane %v1325_v50, %v2239_v51  ;;  %v766_v28 = vmul.f32 %v2137_v21, %v2265_v60 }
  0xc8   : > { %2935 = vst [vmem:[#allocation45_spill] sm:$0xff] %v2474_v15  ;;  %v2549_v15 = vrot.slane %v1037_v22, %v2451_v12  ;;  %v767_v10 = vmul.f32 %v2137_v21, %v2274_v0  ;;  %v2565_v57 = vrot.slane %v1329_v1, %v2239_v51  ;;  %v2568_v22 = vrot.slane %v592_v16, %v2208_v40 }
  0xc9   : > { %v2571_v38 = vrot.slane %v596_v5, %v2208_v40  ;;  %v2574_v50 = vrot.slane %v632_v42, %v2208_v40  ;;  %v2577_v45 = vrot.slane %v636_v61, %v2208_v40  ;;  %v2580_v60 = vrot.slane %v1090_v53, %v2451_v12 }
  0xca   : > { %v768_v21 = vadd.f32 %v766_v28, %v742_v44  ;;  %v769_v0 = vadd.f32 %v767_v10, %v743_v17  ;;  %v2583_v1 = vrot.slane %v1094_v23, %v2451_v12  ;;  %v2586_v16 = vsel %vm994_vm11, 1.0, %v2924_v20 }
  0xcb   : > { %2938 = vst [vmem:[#allocation48_spill] sm:$0xff] %v2586_v16  ;;  %v370_v5 = vmul.f32 %v2160_v27, %v2296_v9  ;;  %v371_v42 = vmul.f32 %v2160_v27, %v2305_v13  ;;  %v411_v61 = vmul.f32 %v2157_v26, %v2341_v55  ;;  %v412_v53 = vmul.f32 %v2157_v26, %v2344_v56 }
  0xcc   : > { %v2519_v3 = vpop.permute.xlu1 %937  ;;  %v792_v44 = vmul.f32 %v2149_v25, %v2313_v18  ;;  %v793_v23 = vmul.f32 %v2149_v25, %v2316_v19  ;;  %v1351_v17 = vrot.slane %v2352_v63, %v2239_v51  ;;  %v1355_v9 = vrot.slane %v2352_v63, %v2242_v52 }
  0xcd   : > { %v1377_v27 = vrot.slane %v2409_v47, %v2239_v51  ;;  %v1381_v26 = vrot.slane %v2409_v47, %v2242_v52  ;;  %v1403_v13 = vrot.slane %v2422_v8, %v2239_v51  ;;  %v1407_v25 = vrot.slane %v2422_v8, %v2242_v52  ;;  %v2939_v8 = vld [vmem:[#allocation27_spill] sm:$0xff] }
  0xce   : > { %v794_v18 = vadd.f32 %v792_v44, %v768_v21  ;;  %v795_v19 = vadd.f32 %v793_v23, %v769_v0  ;;  %v1001_v55 = vrot.slane %v2586_v16, %v2190_v34  ;;  %v1005_v56 = vrot.slane %v2586_v16, %v2193_v35  ;;  %v2626_v0 = vpop.permute.xlu0 %1080  ;;  %v2948_v16 = vld [vmem:[#allocation37_spill] sm:$0xff] }
  0xcf   : > { %v413_v10 = vadd.f32 %v411_v61, %v370_v5  ;;  %v414_v41 = vadd.f32 %v412_v53, %v371_v42  ;;  %v451_v20 = vmul.f32 %v2204_v39, %v2334_v48  ;;  %v818_v47 = vmul.f32 %v2170_v29, %v2358_v2 }
  0xd0   : > { %v819_v21 = vmul.f32 %v2170_v29, %v2939_v8  ;;  %v2629_v44 = vrot.slane %v1351_v17, %v2239_v51  ;;  %v2632_v35 = vrot.slane %v1355_v9, %v2239_v51  ;;  %v2635_v5 = vrot.slane %v1377_v27, %v2239_v51  ;;  %v2945_v17 = vld [vmem:[#allocation24_spill] sm:$0xff] }
  0xd1   : > { %v2562_v36 = vpop.permute.xlu1 %1054  ;;  %v2638_v48 = vrot.slane %v1381_v26, %v2239_v51  ;;  %v2641_v39 = vrot.slane %v1403_v13, %v2239_v51  ;;  %v2644_v49 = vrot.slane %v1407_v25, %v2239_v51  ;;  %v820_v29 = vadd.f32 %v818_v47, %v794_v18  ;;  %v2946_v9 = vld [vmem:[#allocation16_spill] sm:$0xff]  ;;  %v2947_v26 = vld [vmem:[#allocation26_spill] sm:$0xff] }
  0xd2   : > { %2940 = vst [vmem:[#allocation27_spill] sm:$0xff] %v2632_v35  ;;  %2941 = vst [vmem:[#allocation49_spill] sm:$0xff] %v2635_v5  ;;  %v821_v2 = vadd.f32 %v819_v21, %v795_v19  ;;  %v2647_v42 = vrot.slane %v1001_v55, %v2190_v34  ;;  %v2650_v61 = vrot.slane %v1005_v56, %v2190_v34  ;;  %v2949_v25 = vld [vmem:[#allocation12_spill] sm:$0xff]  ;;  %v2950_v47 = vld [vmem:[#allocation38_spill] sm:$0xff] }
  0xd3   : > { %2942 = vst [vmem:[#allocation50_spill] sm:$0xff] %v2638_v48  ;;  %2943 = vst [vmem:[#allocation51_spill] sm:$0xff] %v2641_v39  ;;  %v453_v53 = vadd.f32 %v451_v20, %v413_v10  ;;  %v454_v23 = vadd.f32 %v452_v30, %v414_v41  ;;  %v491_v27 = vmul.f32 %v2946_v9, %v2945_v17  ;;  %v2951_v19 = vld [vmem:[#allocation8_spill] sm:$0xff]  ;;  %v2954_v56 = vld [vmem:[#allocation31_spill] sm:$0xff] }
  0xd4   : > { %2944 = vst [vmem:[#allocation52_spill] sm:$0xff] %v2644_v49  ;;  %v492_v13 = vmul.f32 %v2946_v9, %v2947_v26  ;;  %v844_v63 = vmul.f32 %v2949_v25, %v2948_v16  ;;  %v845_v18 = vmul.f32 %v2949_v25, %v2950_v47  ;;  %v1116_v55 = vrot.slane %v2951_v19, %v2451_v12  ;;  %v2952_v20 = vld [vmem:[#allocation28_spill] sm:$0xff]  ;;  %v2955_v21 = vld [vmem:[#allocation13_spill] sm:$0xff]  ;;  %v2956_v9 = vld [vmem:[#allocation22_spill] sm:$0xff]  ;;  %v978_v49 = vpop.permute.xlu0 %977 }
  0xd5   : > { %v1120_v34 = vrot.slane %v2951_v19, %v2462_v7  ;;  %v2953_v30 = vld [vmem:[#allocation20_spill] sm:$0xff]  ;;  %v1142_v17 = vrot.slane %v2955_v21, %v2451_v12  ;;  %v1146_v16 = vrot.slane %v2955_v21, %v2462_v7  ;;  %v2957_v26 = vld [vmem:[#allocation5_spill] sm:$0xff]  ;;  %v2958_v47 = vld [vmem:[#allocation23_spill] sm:$0xff]  ;;  %v493_v39 = vadd.f32 %v491_v27, %v453_v53 }
  0xd6   : > { %v2604_v28 = vpop.permute.xlu1 %1341  ;;  %v531_v41 = vmul.f32 %v2953_v30, %v2952_v20  ;;  %v532_v10 = vmul.f32 %v2953_v30, %v2954_v56  ;;  %v1214_v25 = vmul.f32 %v2957_v26, %v2956_v9  ;;  %v1215_v37 = vmul.f32 %v2957_v26, %v2958_v47  ;;  %v2959_v48 = vld [vmem:[#allocation34_spill] sm:$0xff]  ;;  %v2961_v56 = vld [vmem:[#allocation36_spill] sm:$0xff]  ;;  %v2962_v21 = vld [vmem:[#allocation21_spill] sm:$0xff] }
  0xd7   : > { %v846_v40 = vadd.f32 %v844_v63, %v820_v29  ;;  %v847_v19 = vadd.f32 %v845_v18, %v821_v2  ;;  %v494_v20 = vadd.f32 %v492_v13, %v454_v23  ;;  %v2960_v5 = vld [vmem:[#allocation30_spill] sm:$0xff]  ;;  %v870_v35 = vmul.f32 %v2962_v21, %v2477_v31  ;;  %v2963_v63 = vld [vmem:[#allocation41_spill] sm:$0xff] }
  0xd8   : > { %v571_v30 = vmul.f32 %v2960_v5, %v2959_v48  ;;  %v572_v52 = vmul.f32 %v2960_v5, %v2961_v56  ;;  %v871_v9 = vmul.f32 %v2962_v21, %v2480_v11  ;;  %v900_v29 = vmul.f32 %v2963_v63, %v2491_v24  ;;  %v649_v18 = vpop.permute.xlu0 %648  ;;  %v2964_v21 = vld [vmem:[#allocation32_spill] sm:$0xff]  ;;  %v2965_v24 = vld [vmem:[#allocation6_spill] sm:$0xff]  ;;  %v2966_v47 = vld [vmem:[#allocation33_spill] sm:$0xff] }
  0xd9   : > { %v901_v2 = vmul.f32 %v2963_v63, %v2494_v33  ;;  %v533_v53 = vadd.f32 %v531_v41, %v493_v39  ;;  %v534_v23 = vadd.f32 %v532_v10, %v494_v20  ;;  %v872_v27 = vadd.f32 %v870_v35, %v846_v40  ;;  %v2968_v10 = vld [vmem:[#allocation18_spill] sm:$0xff]  ;;  %v2969_v40 = vld [vmem:[#allocation43_spill] sm:$0xff] }
  0xda   : > { %v873_v13 = vadd.f32 %v871_v9, %v847_v19  ;;  %v940_v31 = vmul.f32 %v2519_v3, %v2505_v14  ;;  %v941_v11 = vmul.f32 %v2519_v3, %v2508_v43  ;;  %v1240_v26 = vmul.f32 %v2965_v24, %v2964_v21 }
  0xdb   : > { %v609_v8 = vpop.permute.xlu1 %608  ;;  %v1241_v33 = vmul.f32 %v2965_v24, %v2966_v47  ;;  %v573_v39 = vadd.f32 %v571_v30, %v533_v53  ;;  %v574_v41 = vadd.f32 %v572_v52, %v534_v23  ;;  %v1267_v35 = vmul.f32 %v2968_v10, %v2969_v40  ;;  %v2972_v47 = vld [vmem:[#allocation46_spill] sm:$0xff] }
  0xdc   : > { %v611_v48 = vmul.f32 %v609_v8, %v2568_v22  ;;  %v612_v5 = vmul.f32 %v609_v8, %v2571_v38  ;;  %v2967_v22 = vld [vmem:[#allocation40_spill] sm:$0xff]  ;;  %v902_v8 = vadd.f32 %v900_v29, %v872_v27  ;;  %v903_v14 = vadd.f32 %v901_v2, %v873_v13  ;;  %v2970_v2 = vld [vmem:[#allocation29_spill] sm:$0xff] }
  0xdd   : > { %v1266_v38 = vmul.f32 %v2968_v10, %v2967_v22  ;;  %v651_v3 = vmul.f32 %v649_v18, %v2574_v50  ;;  %v652_v56 = vmul.f32 %v649_v18, %v2577_v45  ;;  %v980_v30 = vmul.f32 %v978_v49, %v2511_v32 }
  0xde   : > { %v613_v20 = vadd.f32 %v611_v48, %v573_v39  ;;  %v614_v43 = vadd.f32 %v612_v5, %v574_v41  ;;  %v942_v9 = vadd.f32 %v940_v31, %v902_v8  ;;  %v943_v63 = vadd.f32 %v941_v11, %v903_v14 }
  0xdf   : > { %v981_v52 = vmul.f32 %v978_v49, %v2514_v46  ;;  %v1242_v53 = vadd.f32 %v1240_v26, %v1214_v25  ;;  %v1243_v23 = vadd.f32 %v1241_v33, %v1215_v37  ;;  %v1126_v21 = vrot.slane %v1116_v55, %v2451_v12 }
  0xe0   : > { %v2680_v51 = vpop.permute.xlu1 %1106  ;;  %v1130_v29 = vrot.slane %v1120_v34, %v2451_v12  ;;  %v1292_v48 = vmul.f32 %v2970_v2, %v2483_v6  ;;  %v1293_v50 = vmul.f32 %v2970_v2, %v2488_v58  ;;  %v1152_v45 = vrot.slane %v1142_v17, %v2451_v12  ;;  %v2971_v17 = vld [vmem:[#allocation19_spill] sm:$0xff] }
  0xe1   : > { %v1156_v5 = vrot.slane %v1146_v16, %v2451_v12  ;;  %v1268_v27 = vadd.f32 %v1266_v38, %v1242_v53  ;;  %v1269_v32 = vadd.f32 %v1267_v35, %v1243_v23  ;;  %v653_v13 = vadd.f32 %v651_v3, %v613_v20 }
  0xe2   : > { %v654_v46 = vadd.f32 %v652_v56, %v614_v43  ;;  %v982_v37 = vadd.f32 %v980_v30, %v942_v9  ;;  %v983_v25 = vadd.f32 %v981_v52, %v943_v63  ;;  %v1083_v6 = vmul.f32 %v2626_v0, %v2517_v62  ;;  %v2975_v52 = vld [vmem:[#allocation27_spill] sm:$0xff] }
  0xe3   : > { %v1084_v58 = vmul.f32 %v2626_v0, %v2544_v54  ;;  %v1168_v16 = vrot.slane %v2971_v17, %v2451_v12  ;;  %v1172_v31 = vrot.slane %v2971_v17, %v2462_v7  ;;  %v1294_v11 = vadd.f32 %v1292_v48, %v1268_v27 }
  0xe4   : > { %v1295_v18 = vadd.f32 %v1293_v50, %v1269_v32  ;;  %v1499_v62 = vmul.f32 %v653_v13, %v653_v13  ;;  %v1500_v41 = vmul.f32 %v654_v46, %v654_v46  ;;  %v1057_v7 = vmul.f32 %v2562_v36, %v2549_v15  ;;  %v1394_v15 = vpop.permute.xlu0 %1393  ;;  %v2977_v50 = vld [vmem:[#allocation42_spill] sm:$0xff]  ;;  %v2978_v32 = vld [vmem:[#allocation15_spill] sm:$0xff] }
  0xe5   : > { %v1368_v19 = vpop.permute.xlu1 %1367  ;;  %v1058_v40 = vmul.f32 %v2562_v36, %v2552_v59  ;;  %v1344_v14 = vmul.f32 %v2604_v28, %v2555_v4  ;;  %v1345_v20 = vmul.f32 %v2604_v28, %v2565_v57  ;;  %v1109_v56 = vmul.f32 %v2680_v51, %v2580_v60 }
  0xe6   : > { %v1110_v9 = vmul.f32 %v2680_v51, %v2583_v1  ;;  %v1178_v59 = vrot.slane %v1168_v16, %v2451_v12  ;;  %v1182_v36 = vrot.slane %v1172_v31, %v2451_v12  ;;  %v1370_v4 = vmul.f32 %v1368_v19, %v2629_v44  ;;  %v2976_v1 = vld [vmem:[#allocation14_spill] sm:$0xff] }
  0xe7   : > { %v1371_v57 = vmul.f32 %v1368_v19, %v2975_v52  ;;  %v1085_v28 = vadd.f32 %v1083_v6, %v1057_v7  ;;  %v1086_v53 = vadd.f32 %v1084_v58, %v1058_v40  ;;  %v1429_v27 = vrot.slane %v2977_v50, %v2976_v1 }
  0xe8   : > { %v1433_v12 = vrot.slane %v2977_v50, %v2978_v32 }
  0xe9   : > { %v1439_v31 = vrot.slane %v1429_v27, %v2976_v1 }
  0xea   : > { %v1018_v49 = vpop.permute.xlu1 %1017 }
  0xeb   : > { %v1020_v55 = vmul.f32 %v1018_v49, %v2647_v42  ;;  %v1021_v34 = vmul.f32 %v1018_v49, %v2650_v61  ;;  %v2973_v42 = vld [vmem:[#allocation45_spill] sm:$0xff]  ;;  %v2974_v61 = vld [vmem:[#allocation47_spill] sm:$0xff] }
  0xec   : > { %v1318_v33 = vmul.f32 %v2973_v42, %v2972_v47  ;;  %v1319_v39 = vmul.f32 %v2973_v42, %v2974_v61  ;;  %v2981_v42 = vld [vmem:[#allocation51_spill] sm:$0xff]  ;;  %v2982_v61 = vld [vmem:[#allocation52_spill] sm:$0xff] }
  0xed   : > { %v1022_v24 = vadd.f32 %v1020_v55, %v982_v37  ;;  %v1023_v26 = vadd.f32 %v1021_v34, %v983_v25  ;;  %v2979_v25 = vld [vmem:[#allocation49_spill] sm:$0xff]  ;;  %v2980_v34 = vld [vmem:[#allocation50_spill] sm:$0xff] }
  0xee   : > { %v1320_v63 = vadd.f32 %v1318_v33, %v1294_v11  ;;  %v1321_v30 = vadd.f32 %v1319_v39, %v1295_v18  ;;  %v1396_v55 = vmul.f32 %v1394_v15, %v2979_v25  ;;  %v1443_v11 = vrot.slane %v1433_v12, %v2976_v1 }
  0xef   : > { %v1501_v22 = vadd.f32 %v1022_v24, %v653_v13  ;;  %v1502_v54 = vadd.f32 %v1023_v26, %v654_v46  ;;  %v1503_v0 = vmul.f32 %v1022_v24, %v1022_v24  ;;  %v1504_v10 = vmul.f32 %v1023_v26, %v1023_v26  ;;  %v1133_v38 = vpop.permute.xlu1 %1132 }
  0xf0   : > { %v1550_v35 = vpack.c.bf16 %v1023_v26, %v654_v46  ;;  %v1549_v8 = vpack.c.bf16 %v1022_v24, %v653_v13  ;;  %v1135_v23 = vmul.f32 %v1133_v38, %v1126_v21  ;;  %v1136_v60 = vmul.f32 %v1133_v38, %v1130_v29  ;;  %v1420_v29 = vpop.permute.xlu0 %1419 }
  0xf1   : > { %v1505_v43 = vadd.f32 %v1503_v0, %v1499_v62  ;;  %v1506_v3 = vadd.f32 %v1504_v10, %v1500_v41  ;;  %v1346_v48 = vadd.f32 %v1344_v14, %v1320_v63  ;;  %v1347_v51 = vadd.f32 %v1345_v20, %v1321_v30 }
  0xf2   : > { %1598 = vmatprep.subr.bf16.mxu0 %v1550_v35  ;;  %v1111_v13 = vadd.f32 %v1109_v56, %v1085_v28  ;;  %v1112_v46 = vadd.f32 %v1110_v9, %v1086_v53  ;;  %v1397_v21 = vmul.f32 %v1394_v15, %v2980_v34  ;;  %v1422_v33 = vmul.f32 %v1420_v29, %v2981_v42 }
  0xf3   : > { %1599 = vmatpush1.bf16.msra.mxu0 %v1549_v8  ;;  %v1372_v37 = vadd.f32 %v1370_v4, %v1346_v48  ;;  %v1373_v19 = vadd.f32 %v1371_v57, %v1347_v51  ;;  %v1423_v39 = vmul.f32 %v1420_v29, %v2982_v61 }
  0xf4   : > { %v1159_v2 = vpop.permute.xlu1 %1158  ;;  %v1137_v6 = vadd.f32 %v1135_v23, %v1111_v13  ;;  %v1138_v58 = vadd.f32 %v1136_v60, %v1112_v46  ;;  %v1953_v23 = vld [vmem:[%s2844_s4] sm:$0xff]   ;;  %v1564_v42 = vpop.permute.xlu0 %1563 }
  0xf5   : > { %v1161_v49 = vmul.f32 %v1159_v2, %v1152_v45  ;;  %v1162_v44 = vmul.f32 %v1159_v2, %v1156_v5  ;;  %v1398_v45 = vadd.f32 %v1396_v55, %v1372_v37  ;;  %v1399_v5 = vadd.f32 %v1397_v21, %v1373_v19  ;;  %v1954_v55 = vld [vmem:[%s2844_s4 + $0x8] sm:$0xff]  }
  0xf7   : > { %v1163_v18 = vadd.f32 %v1161_v49, %v1137_v6  ;;  %v1164_v24 = vadd.f32 %v1162_v44, %v1138_v58  ;;  %v1424_v35 = vadd.f32 %v1422_v33, %v1398_v45  ;;  %v1425_v8 = vadd.f32 %v1423_v39, %v1399_v5  ;;  %v1732_v45 = vld [vmem:[%s2848_s8] sm:$0xff]  ;;  %v1733_v5 = vld [vmem:[%s2848_s8 + $0x8] sm:$0xff] }
  0xf8   : > { %v2983_v49 = vmov 0  }
  0xf9   : > { %v1185_v16 = vpop.permute.xlu1 %1184 }
  0xfa   : > { %v1187_v26 = vmul.f32 %v1185_v16, %v1178_v59  ;;  %v1188_v47 = vmul.f32 %v1185_v16, %v1182_v36 }
  0xfc   : > { %v1189_v62 = vadd.f32 %v1187_v26, %v1163_v18  ;;  %v1190_v41 = vadd.f32 %v1188_v47, %v1164_v24  ;;  %v1665_v26 = vld [vmem:[%s2847_s7] sm:$0xff]  ;;  %v1666_v47 = vld [vmem:[%s2847_s7 + $0x8] sm:$0xff] }
  0xfd   : > { %1669 = vperm.xlu1 %1950, %v1665_v26  }
  0xfe   : > { %v1507_v0 = vadd.f32 %v1501_v22, %v1189_v62  ;;  %v1508_v10 = vadd.f32 %v1502_v54, %v1190_v41  ;;  %v1509_v38 = vmul.f32 %v1189_v62, %v1189_v62  ;;  %v1510_v7 = vmul.f32 %v1190_v41, %v1190_v41  ;;  %v1446_v40 = vpop.permute.xlu1 %1445 }
  0xff   : > { %v1448_v14 = vmul.f32 %v1446_v40, %v1439_v31  ;;  %v1449_v20 = vmul.f32 %v1446_v40, %v1443_v11 }
 0x100   : > { %v1511_v56 = vadd.f32 %v1509_v38, %v1505_v43  ;;  %v1512_v9 = vadd.f32 %v1510_v7, %v1506_v3 }
 0x101   : > { %v1450_v15 = vadd.f32 %v1448_v14, %v1424_v35  ;;  %v1451_v59 = vadd.f32 %v1449_v20, %v1425_v8  ;;  %1674 = vperm.xlu1 %1950, %v1666_v47  }
 0x103   : > { %v1513_v36 = vadd.f32 %v1507_v0, %v1450_v15  ;;  %v1514_v63 = vadd.f32 %v1508_v10, %v1451_v59  ;;  %v1515_v30 = vmul.f32 %v1450_v15, %v1450_v15  ;;  %v1516_v4 = vmul.f32 %v1451_v59, %v1451_v59 }
 0x104   : > { %v1552_v52 = vpack.c.bf16 %v1451_v59, %v1190_v41  ;;  %v1551_v57 = vpack.c.bf16 %v1450_v15, %v1189_v62  ;;  %v1569_v62 = vpop.permute.xlu1 %1568 }
 0x105   : > { %v1517_v28 = vadd.f32 %v1515_v30, %v1511_v56  ;;  %v1518_v22 = vadd.f32 %v1516_v4, %v1512_v9  ;;  %v1519_v54 = vmul.f32 %v1513_v36, %v1513_v36  ;;  %v1520_v53 = vmul.f32 %v1514_v63, %v1514_v63  ;;  %1736 = vperm.xlu1 %1950, %v1732_v45   ;;  %v1579_v63 = vpop.permute.xlu0 %1578 }
 0x106   : > { %1600 = vmatprep.subr.bf16.mxu0 %v1552_v52 }
 0x107   : > { %v1521_v43 = vrot.slane %v1519_v54, 4  ;;  %v1527_v3 = vrot.slane %v1520_v53, 4  ;;  %v1533_v60 = vrot.slane %v1517_v28, 4  ;;  %v1539_v2 = vrot.slane %v1518_v22, 4  ;;  %1601 = vmatpush1.bf16.msra.mxu0 %v1551_v57 }
 0x108   : > { %v1574_v56 = vpop.permute.xlu1 %1573 }
 0x109   : > { %v1522_v48 = vadd.f32 %v1521_v43, %v1519_v54  ;;  %v1528_v51 = vadd.f32 %v1527_v3, %v1520_v53  ;;  %v1534_v1 = vadd.f32 %v1533_v60, %v1517_v28  ;;  %v1540_v27 = vadd.f32 %v1539_v2, %v1518_v22  ;;  %1741 = vperm.xlu1 %1950, %v1733_v5   ;;  %v1955_v60 = vld [vmem:[%s2846_s6] sm:$0xff]  }
 0x10a   : > { %1878 = vmatmul.mubr.msk.bf16.vlgmr.msra.gmra.mrb[0].mxu0 %vm1591_vm12, %v1953_v23 }
 0x10b   : > { %v1523_v32 = vrot.slane %v1522_v48, 2  ;;  %v1529_v12 = vrot.slane %v1528_v51, 2  ;;  %v1535_v13 = vrot.slane %v1534_v1, 2  ;;  %v1541_v46 = vrot.slane %v1540_v27, 2  ;;  %1640 = vmatprep.mubr.bf16.mxu0 %v2983_v49  ;;  %v2986_v49 = vld [vmem:[#allocation17_spill] sm:$0xff] }
 0x10c   : > { %v377_v2 = vpop.permute.xlu1 %376 }
 0x10d   : > { %v1524_v44 = vadd.f32 %v1523_v32, %v1522_v48  ;;  %v1530_v37 = vadd.f32 %v1529_v12, %v1528_v51  ;;  %v1536_v19 = vadd.f32 %v1535_v13, %v1534_v1  ;;  %v1542_v25 = vadd.f32 %v1541_v46, %v1540_v27  ;;  %v417_v48 = vpop.permute.xlu0 %416  ;;  %v2984_v1 = vld [vmem:[#allocation9_spill] sm:$0xff]  ;;  %v2985_v12 = vld [vmem:[#allocation11_spill] sm:$0xff] }
 0x10e   : > { %v382_v27 = vrot.slane %v377_v2, %v2984_v1  ;;  %v422_v32 = vrot.slane %v417_v48, %v2984_v1 }
 0x10f   : > { %v1525_v34 = vrot.slane %v1524_v44, 1  ;;  %v1531_v21 = vrot.slane %v1530_v37, 1  ;;  %v1537_v29 = vrot.slane %v1536_v19, 1  ;;  %v1543_v6 = vrot.slane %v1542_v25, 1 }
 0x110   : > { %v457_v51 = vpop.permute.xlu1 %456  ;;  %v383_v13 = vmul.f32 %v2985_v12, %v382_v27  ;;  %v2995_v27 = vmov 0.0  }
 0x111   : > { %v2764_v58 = vadd.f32 %v1525_v34, %v1524_v44  ;;  %v2766_v16 = vadd.f32 %v1531_v21, %v1530_v37  ;;  %v2768_v31 = vadd.f32 %v1537_v29, %v1536_v19  ;;  %v2770_v11 = vadd.f32 %v1543_v6, %v1542_v25  ;;  %v2987_v19 = vld [vmem:[#allocation7_spill] sm:$0xff]  ;;  %v537_v21 = vpop.permute.xlu0 %536  ;;  %v2988_v6 = vld [vmem:[#allocation8_spill] sm:$0xff] }
 0x112   : > { %1879 = vmatmul.mubr.msk.bf16.gmra.mrb[4].mxu0 %vm1591_vm12, %v1954_v55  ;;  %v462_v46 = vrot.slane %v457_v51, %v2984_v1  ;;  %v423_v44 = vmul.f32 %v2986_v49, %v422_v32  ;;  %v542_v45 = vrot.slane %v537_v21, %v2984_v1 }
 0x113   : > { %v1545_v18 = vsub.f32 %v2764_v58, %v2768_v31  ;;  %v1546_v24 = vsub.f32 %v2766_v16, %v2770_v11  ;;  %v2999_v16 = vlaneseq }
 0x114   : > { %v463_v25 = vmul.f32 %v2987_v19, %v462_v46  ;;  %v424_v34 = vadd.f32 %v423_v44, %v383_v13  ;;  %v2996_v13 = vld [vmem:[#allocation48_spill] sm:$0xff] }
 0x115   : > { %v497_v37 = vpop.permute.xlu1 %496  ;;  %vm1797_vm0 = vcmp.lt.s32.totalorder %v2999_v16, 256 }
 0x116   : > { %v502_v55 = vrot.slane %v497_v37, %v2984_v1  ;;  %v464_v47 = vadd.f32 %v463_v25, %v424_v34 }
 0x118   : > { %v503_v26 = vmul.f32 %v2988_v6, %v502_v55 }
 0x11a   : > { %v577_v29 = vpop.permute.xlu1 %576 }
 0x11b   : > { %v582_v5 = vrot.slane %v577_v29, %v2984_v1 }
 0x1dd   : > { %v1632_v33 = vpop.f32.mrb[0].mxu0 }
 0x1de   : > { %v1633_v61 = vadd.f32 %v1632_v33, %v1564_v42  ;;  %v1634_v39 = vpop.f32.mrb[1].mxu0  ;;  %v2989_v33 = vld [vmem:[#allocation13_spill] sm:$0xff] }
 0x1df   : > { %v1635_v41 = vadd.f32 %v1634_v39, %v1564_v42  ;;  %v1636_v0 = vpop.f32.mrb[2].mxu0  ;;  %v504_v42 = vadd.f32 %v503_v26, %v464_v47  ;;  %v617_v39 = vpop.permute.xlu1 %616 }
 0x1e0   : > { %v1637_v10 = vadd.f32 %v1636_v0, %v1569_v62  ;;  %v1638_v38 = vpop.f32.mrb[3].mxu0  ;;  %v1651_v40 = vmax.f32 %v1633_v61, 0.0  ;;  %v543_v61 = vmul.f32 %v2989_v33, %v542_v45  ;;  %v622_v0 = vrot.slane %v617_v39, %v2984_v1 }
 0x1e1   : > { %v1639_v7 = vadd.f32 %v1638_v38, %v1569_v62  ;;  %v1652_v8 = vmax.f32 %v1635_v41, 0.0  ;;  %v583_v62 = vmul.f32 %v2971_v17, %v582_v5 }
 0x1e2   : > { %v1653_v35 = vmax.f32 %v1637_v10, 0.0  ;;  %v544_v41 = vadd.f32 %v543_v61, %v504_v42  ;;  %v657_v10 = vpop.permute.xlu0 %656 }
 0x1e3   : > { %v1654_v14 = vmax.f32 %v1639_v7, 0.0  ;;  %v906_v38 = vpop.permute.xlu1 %905 }
 0x1e4   : > { %v1661_v20 = vpack.c.bf16 %v1653_v35, %v1651_v40  ;;  %v584_v7 = vadd.f32 %v583_v62, %v544_v41  ;;  %v2990_v40 = vld [vmem:[#allocation25_spill] sm:$0xff] }
 0x1e5   : > { %v1642_v9 = vpop.f32.mrb[4].mxu0  ;;  %v1662_v15 = vpack.c.bf16 %v1654_v14, %v1652_v8  ;;  %v623_v35 = vmul.f32 %v2990_v40, %v622_v0  ;;  %v662_v8 = vrot.slane %v657_v10, %v2984_v1 }
 0x1e6   : > { %v1643_v59 = vadd.f32 %v1642_v9, %v1574_v56  ;;  %v1644_v36 = vpop.f32.mrb[5].mxu0 }
 0x1e7   : > { %v1645_v30 = vadd.f32 %v1644_v36, %v1574_v56  ;;  %v1646_v4 = vpop.f32.mrb[6].mxu0  ;;  %1685 = vmatprep.subr.bf16.mxu1 %v1662_v15  ;;  %v624_v14 = vadd.f32 %v623_v35, %v584_v7  ;;  %v2991_v56 = vld [vmem:[#allocation35_spill] sm:$0xff]  ;;  %v946_v15 = vpop.permute.xlu1 %945 }
 0x1e8   : > { %v1647_v52 = vadd.f32 %v1646_v4, %v1579_v63  ;;  %v1648_v57 = vpop.f32.mrb[7].mxu0  ;;  %1686 = vmatpush1.bf16.msra.mxu1 %v1661_v20  ;;  %v1655_v22 = vmax.f32 %v1643_v59, 0.0  ;;  %v911_v20 = vrot.slane %v906_v38, %v2984_v1  ;;  %v663_v9 = vmul.f32 %v2991_v56, %v662_v8  ;;  %v986_v59 = vpop.permute.xlu0 %985  ;;  %v2992_v36 = vld [vmem:[#allocation39_spill] sm:$0xff] }
 0x1e9   : > { %v1649_v28 = vadd.f32 %v1648_v57, %v1579_v63  ;;  %v1656_v53 = vmax.f32 %v1645_v30, 0.0  ;;  %v951_v30 = vrot.slane %v946_v15, %v2984_v1  ;;  %v991_v57 = vrot.slane %v986_v59, %v2984_v1 }
 0x1ea   : > { %v1657_v54 = vmax.f32 %v1647_v52, 0.0  ;;  %v912_v17 = vmul.f32 %v2992_v36, %v911_v20  ;;  %v664_v63 = vadd.f32 %v663_v9, %v624_v14 }
 0x1eb   : > { %v1658_v23 = vmax.f32 %v1649_v28, 0.0  ;;  %v952_v52 = vmul.f32 %v2977_v50, %v951_v30  ;;  %v2993_v28 = vld [vmem:[#allocation3_spill] sm:$0xff]  ;;  %v1670_v51 = vpop.permute.xlu1 %1669 }
 0x1ec   : > { %v1663_v43 = vpack.c.bf16 %v1657_v54, %v1655_v22  ;;  %v913_v4 = vadd.f32 %v912_v17, %v664_v63  ;;  %v1463_v22 = vrot.slane %v2993_v28, 6  ;;  %v1956_v54 = vld [vmem:[%s2167_s14] sm:$0xff] }
 0x1ed   : > { %v1664_v3 = vpack.c.bf16 %v1658_v23, %v1656_v53  ;;  %v1475_v53 = vrot.slane %v1956_v54, 5  ;;  %v1026_v23 = vpop.permute.xlu0 %1025 }
 0x1ee   : > { %v1031_v48 = vrot.slane %v1026_v23, %v2984_v1  ;;  %vm1464_vm13 = vcmp.eq.s32.totalorder %v1956_v54, %v1463_v22 }
 0x1ef   : > { %1687 = vmatprep.subr.bf16.mxu1 %v1664_v3  ;;  %v953_v3 = vadd.f32 %v952_v52, %v913_v4  ;;  %vm1476_vm14 = vcmp.eq.s32.totalorder %v1956_v54, %v1475_v53  ;;  %v1872_v32 = vsel %vm1464_vm13, 1.0, %v2995_v27  ;;  %v1675_v37 = vpop.permute.xlu1 %1674 }
 0x1f0   : > { %1688 = vmatpush1.bf16.msra.mxu1 %v1663_v43  ;;  %v1452_v43 = vrot.slane %v1956_v54, 7  ;;  %v1874_v50 = vsel %vm1476_vm14, 1.0, %v2995_v27  ;;  %v1032_v46 = vmul.f32 %v2996_v13, %v1031_v48  ;;  %v1548_v13 = vmul.f32 0.5, %v1546_v24 }
 0x1f1   : > { %v1479_v44 = vmax.f32 %v1874_v50, %v1872_v32  ;;  %v1547_v50 = vmul.f32 0.5, %v1545_v18 }
 0x1f2   : > { %vm1453_vm15 = vcmp.eq.s32.totalorder %v1956_v54, %v1452_v43 }
 0x1f3   : > { %1881 = vmatmul.mubr.msk.bf16.vlgmr.msra.gmra.mrb[0].mxu1 %vm1591_vm12, %v1955_v60  ;;  %v2994_v60 = vld [vmem:[#allocation44_spill] sm:$0xff]  ;;  %v1870_v49 = vsel %vm1453_vm15, 1.0, %v2995_v27  ;;  %v1737_v6 = vpop.permute.xlu1 %1736 }
 0x1f4   : > { %v992_v2 = vmul.f32 %v2994_v60, %v991_v57  ;;  %v1467_v19 = vmax.f32 %v1872_v32, %v1870_v49  ;;  %v1456_v55 = vsub.f32 1.0, %v1870_v49  ;;  %v1480_v34 = vmax.f32 %v1479_v44, %v1870_v49  ;;  %v1492_v57 = vpop.permute.xlu0 %1491 }
 0x1f5   : > { %v1497_v23 = vrot.slane %v1492_v57, %v2984_v1 }
 0x1f6   : > { %v993_v12 = vadd.f32 %v992_v2, %v953_v3  ;;  %v1468_v21 = vsub.f32 1.0, %v1467_v19  ;;  %v1481_v5 = vsub.f32 1.0, %v1480_v34  ;;  %v1978_v2 = vmov 1966171168   ;;  %v2997_v19 = vld [vmem:[#allocation10_spill] sm:$0xff] }
 0x1f7   : > { %v1742_v8 = vpop.permute.xlu1 %1741  ;;  %v1781_v48 = vunpack.c.l.s4 %v1978_v2 }
 0x1f8   : > { %v1033_v25 = vadd.f32 %v1032_v46, %v993_v12  ;;  %v1469_v61 = vmul.f32 %v1468_v21, %v584_v7  ;;  %v1482_v35 = vmul.f32 %v1481_v5, %v953_v3 }
 0x1f9   : > { %v1782_v49 = vunpack.c.0.s8 %v1781_v48 }
 0x1fa   : > { %v1457_v29 = vmul.f32 %v1456_v55, %v1033_v25  ;;  %v1873_v56 = vrot.slane %v1469_v61, 10  ;;  %v1875_v7 = vrot.slane %v1482_v35, 11 }
 0x1fc   : > { %v1871_v39 = vrot.slane %v1457_v29, 9  ;;  %v2998_v29 = vld [vmem:[#allocation4_spill] sm:$0xff] }
 0x1fe   : > { %v1462_v20 = vadd.f32 %v1871_v39, %v664_v63 }
 0x200   : > { %v1474_v4 = vadd.f32 %v1873_v56, %v1462_v20 }
 0x202   : > { %v1487_v53 = vadd.f32 %v1875_v7, %v1474_v4 }
 0x2c6   : > { %v1719_v26 = vpop.f32.mrb[0].mxu1 }
 0x2c7   : > { %v1720_v47 = vadd.f32 %v1719_v26, %v1670_v51  ;;  %v1721_v45 = vpop.f32.mrb[1].mxu1 }
 0x2c8   : > { %v1722_v42 = vadd.f32 %v1721_v45, %v1670_v51  ;;  %v1723_v33 = vpop.f32.mrb[2].mxu1  ;;  %v1498_v51 = vadd.f32 %v1497_v23, %v1487_v53 }
 0x2c9   : > { %v1728_v62 = vmax.f32 %v1720_v47, 0.0  ;;  %v1724_v41 = vadd.f32 %v1723_v33, %v1675_v37  ;;  %v1725_v0 = vpop.f32.mrb[3].mxu1 }
 0x2ca   : > { %v1729_v10 = vmax.f32 %v1722_v42, 0.0  ;;  %v1726_v38 = vadd.f32 %v1725_v0, %v1675_v37  ;;  %v1768_v44 = vrot.slane %v1498_v51, %v2984_v1  ;;  %v1772_v25 = vrot.slane %v1498_v51, %v2997_v19 }
 0x2cb   : > { %v1730_v40 = vmax.f32 %v1724_v41, 0.0  ;;  %v1744_v9 = vmul.f32 %v1737_v6, %v1728_v62 }
 0x2cc   : > { %v1731_v14 = vmax.f32 %v1726_v38, 0.0  ;;  %v1745_v59 = vmul.f32 %v1737_v6, %v1729_v10  ;;  %v1785_v6 = vsub.s32 %v1782_v49, %v2998_v29 }
 0x2cd   : > { %v1746_v15 = vmul.f32 %v1742_v8, %v1730_v40 }
 0x2ce   : > { %v1747_v36 = vmul.f32 %v1742_v8, %v1731_v14 }
 0x2cf   : > { %v1748_v17 = vadd.f32 %v1746_v15, %v1744_v9 }
 0x2d0   : > { %v1755_v30 = vadd.f32 %v1747_v36, %v1745_v59 }
 0x2d1   : > { %v1749_v52 = vrot.slane %v1748_v17, 4 }
 0x2d2   : > { %v1756_v28 = vrot.slane %v1755_v30, 4 }
 0x2d3   : > { %v1750_v22 = vadd.f32 %v1749_v52, %v1748_v17 }
 0x2d4   : > { %v1757_v54 = vadd.f32 %v1756_v28, %v1755_v30 }
 0x2d5   : > { %v1751_v43 = vrot.slane %v1750_v22, 2 }
 0x2d6   : > { %v1758_v3 = vrot.slane %v1757_v54, 2 }
 0x2d7   : > { %v1752_v63 = vadd.f32 %v1751_v43, %v1750_v22 }
 0x2d8   : > { %v1759_v60 = vadd.f32 %v1758_v3, %v1757_v54 }
 0x2d9   : > { %v1753_v27 = vrot.slane %v1752_v63, 1 }
 0x2da   : > { %v1760_v32 = vrot.slane %v1759_v60, 1 }
 0x2db   : > { %v1754_v12 = vadd.f32 %v1753_v27, %v1752_v63 }
 0x2dc   : > { %v1761_v46 = vadd.f32 %v1760_v32, %v1759_v60 }
 0x2dd   : > { %v1762_v37 = vadd.f32 %v1754_v12, %v1547_v50 }
 0x2de   : > { %v1763_v55 = vadd.f32 %v1761_v46, %v1548_v13 }
 0x2df   : > { %v1775_v34 = vadd.f32 %v1768_v44, %v1762_v37 }
 0x2e0   : > { %v1776_v21 = vadd.f32 %v1772_v25, %v1763_v55 }
 0x2e2   : > { %v1779_v26 = vcombine.low %v1775_v34, %v1776_v21 }
 0x2e4   : > { %v1786_v58 = vrot.slane %v1779_v26, %v1785_v6 }
 0x2e6   : > { %v1793_v31 = vrot.slane %v1786_v58, %v1785_v6 }
 0x2e8   : > { %1799 = vst.msk [vmem:[%s334_s10] sm:$0x3] %vm1797_vm0, %v1793_v31 }
 0x2e9 PF: > { %s21_s11 = sadd.s32 1, %s1963_s11  }
 0x2ea   : > { %p18_p4 = scmp.ge.s32.totalorder %s21_s11, 4  }
 0x2ec   :  { %20 = sbr.rel (!%p18_p4) target bundleno = 3 (0x3), region = 86 }

</bundles_post_ra>
